<compile_context>
chip_gen: v5e
topology: v5e:2x2
jax: 0.10.0
libtpu: 0.0.40
codegen_flags: <defaults>
</compile_context>

<pallas_src>
import numpy as np
import jax
import jax.numpy as jnp
from jax.experimental import pallas as pl
from jax.experimental.pallas import tpu as pltpu

# ----------------------------- configuration -------------------------------
NUM_LAYERS        = 2      # sigma net hidden layers
HIDDEN_DIM        = 64
GEO_FEAT_DIM      = 15
NUM_LAYERS_COLOR  = 2      # color net hidden layers
HIDDEN_DIM_COLOR  = 64
BOUND             = 1.0
EXPRESSION_DIM    = 16
LATENT_CODE_DIM   = 16

N_LEVELS          = 16
F_PER_LEVEL       = 2
LOG2_HASHMAP      = 19
BASE_RES          = 16
ENC_DIM           = N_LEVELS * F_PER_LEVEL          # 32
SH_DIM            = 16                               # SphericalHarmonics degree 4
SIGMA_OUT         = 1 + GEO_FEAT_DIM                 # 16
COLOR_IN          = SH_DIM + SIGMA_OUT               # 32 (sigma channel weight-masked)
HASHMAP_SIZE      = 2 ** LOG2_HASHMAP

PER_LEVEL_SCALE   = float(np.exp2(np.log2(2048 * BOUND / 16) / (N_LEVELS - 1)))
LEVEL_SCALES      = [BASE_RES * PER_LEVEL_SCALE ** l - 1.0 for l in range(N_LEVELS)]
LEVEL_RES         = [int(np.ceil(s)) + 1 for s in LEVEL_SCALES]
HASH_PRIMES       = np.array([1, 2654435761, 805459861], dtype=np.uint32)


# --------------------------- parameter creation -----------------------------
def init_params(key):
    ks = jax.random.split(key, 12)

    def w(k, shape, fan_in):
        return (jax.random.normal(k, shape, jnp.float32) / np.sqrt(fan_in)).astype(jnp.float32)

    sigma_in = ENC_DIM + EXPRESSION_DIM + LATENT_CODE_DIM
    color_in = SH_DIM + GEO_FEAT_DIM

    # tcnn hash grid init: uniform(-1e-4, 1e-4)
    table = jax.random.uniform(ks[0], (N_LEVELS, HASHMAP_SIZE, F_PER_LEVEL),
                               jnp.float32, -1e-4, 1e-4)

    params = dict(
        table=table,
        # sigma_net first layer, split along the concat axis:
        #   concat(enc_x, exp, latent) @ W0  ==  enc_x@W0x + exp@W0e + latent@W0l
        W0x=w(ks[1], (ENC_DIM, HIDDEN_DIM), sigma_in),
        W0e=w(ks[2], (EXPRESSION_DIM, HIDDEN_DIM), sigma_in),
        W0l=w(ks[3], (LATENT_CODE_DIM, HIDDEN_DIM), sigma_in),
        W1 =w(ks[4], (HIDDEN_DIM, HIDDEN_DIM), HIDDEN_DIM),
        W2 =w(ks[5], (HIDDEN_DIM, SIGMA_OUT), HIDDEN_DIM),
        # color_net first layer, split into SH part and geo_feat part.
        # Wc0g acts on the full 16-wide sigma-net output h; its row 0 (the
        # sigma channel) is zeroed so only geo_feat = h[:, 1:] contributes.
        Wc0d=w(ks[6], (SH_DIM, HIDDEN_DIM_COLOR), color_in),
        Wc0g=w(ks[7], (SIGMA_OUT, HIDDEN_DIM_COLOR), color_in).at[0].set(0.0),
        Wc1 =w(ks[8], (HIDDEN_DIM_COLOR, HIDDEN_DIM_COLOR), HIDDEN_DIM_COLOR),
        Wc2 =w(ks[9], (HIDDEN_DIM_COLOR, 3), HIDDEN_DIM_COLOR),
    )
    return params


# ------------------------ hash grid encoding (glue) --------------------------
# TODO(synk): data-dependent gather over 16 x 2^19-entry tables stays in plain
# JAX (vectorized into ONE gather over all levels/corners).  Fusing into Pallas
# needs a per-generation plan: VMEM-resident bf16 table on v5e/v6e (128 MiB),
# HBM-streamed manual-DMA gather on v7x (64 MiB VMEM).
def hash_grid_encode(x01, table):
    n = x01.shape[0]
    primes = jnp.asarray(HASH_PRIMES)                                     # (3,) u32
    scales = jnp.asarray(LEVEL_SCALES, jnp.float32)                       # (L,)

    pos = x01[:, None, :] * scales[None, :, None] + 0.5                   # (N, L, 3)
    pos_grid = jnp.floor(pos)
    frac = pos - pos_grid
    pos_grid = pos_grid.astype(jnp.int32)

    corners = np.array([[(c >> 0) & 1, (c >> 1) & 1, (c >> 2) & 1]
                        for c in range(8)], dtype=np.int32)               # (8, 3)
    idx3 = pos_grid[:, :, None, :] + corners[None, None, :, :]            # (N, L, 8, 3)
    w = jnp.where(corners[None, None, :, :] == 1,
                  frac[:, :, None, :], 1.0 - frac[:, :, None, :])
    wgt = jnp.prod(w, axis=-1)                                            # (N, L, 8)

    # per-level index: dense (row-major) where res^3 <= table size, else spatial hash
    dense_mask = np.array([(r ** 3) <= HASHMAP_SIZE for r in LEVEL_RES])
    res_j = jnp.asarray(np.asarray(LEVEL_RES, np.int32))[None, :, None]   # (1, L, 1)
    dense_idx = idx3[..., 0] + res_j * (idx3[..., 1] + res_j * idx3[..., 2])
    u = idx3.astype(jnp.uint32) * primes[None, None, None, :]
    hash_idx = ((u[..., 0] ^ u[..., 1] ^ u[..., 2])
                % jnp.uint32(HASHMAP_SIZE)).astype(jnp.int32)
    idx = jnp.where(jnp.asarray(dense_mask)[None, :, None], dense_idx, hash_idx)

    level_off = (jnp.arange(N_LEVELS, dtype=jnp.int32) * HASHMAP_SIZE)[None, :, None]
    flat = (idx + level_off).reshape(-1)                                  # (N*L*8,)
    feats = jnp.take(table.reshape(N_LEVELS * HASHMAP_SIZE, F_PER_LEVEL), flat, axis=0)
    feats = feats.reshape(n, N_LEVELS, 8, F_PER_LEVEL)
    enc = jnp.sum(wgt[..., None] * feats, axis=2)                         # (N, L, F)
    return enc.reshape(n, N_LEVELS * F_PER_LEVEL)                         # (N, 32)


# ----------------------- SH degree-4 basis (tcnn formulas) -------------------
def _sh4_components(x, y, z):
    x2, y2, z2 = x * x, y * y, z * z
    xy, yz, xz = x * y, y * z, x * z
    return [
        jnp.full_like(x, 0.28209479177387814),
        -0.48860251190291987 * y,
        0.48860251190291987 * z,
        -0.48860251190291987 * x,
        1.0925484305920792 * xy,
        -1.0925484305920792 * yz,
        0.94617469575755997 * z2 - 0.31539156525251999,
        -1.0925484305920792 * xz,
        0.54627421529603959 * (x2 - y2),
        0.59004358992664352 * y * (-3.0 * x2 + y2),
        2.8906114426405538 * xy * z,
        0.45704579946446572 * y * (1.0 - 5.0 * z2),
        0.3731763325901154 * z * (5.0 * z2 - 3.0),
        0.45704579946446572 * x * (1.0 - 5.0 * z2),
        1.4453057213202769 * z * (x2 - y2),
        0.59004358992664352 * x * (-x2 + 3.0 * y2),
    ]


# ------------------------------ Pallas kernel --------------------------------
def _heads_kernel(encx_ref, d_ref, bias_ref,
                  w0_ref, w1_ref, w2_ref, wc0_ref, wc1_ref, wc2_ref,
                  out_ref, cin_ref):
    f32 = jnp.float32
    bf16 = jnp.bfloat16

    # ---- sigma_net (FullyFusedMLP, 2 hidden ReLU layers, no biases) ----
    # Transposed layout: activations are (features, TN); bf16 MXU, f32 accumulate.
    # exp/latent contribution is the precomputed (64,1) bias (batch-constant).
    h = jnp.dot(w0_ref[...], encx_ref[...], preferred_element_type=f32)        # (64, TN)
    h = jnp.maximum(h + bias_ref[...], 0.0)
    h = jnp.maximum(jnp.dot(w1_ref[...], h.astype(bf16),
                            preferred_element_type=f32), 0.0)                  # (64, TN)
    h2 = jnp.dot(w2_ref[...], h.astype(bf16),
                 preferred_element_type=f32)                                   # (16, TN)
    # h2 row 0 = sigma pre-activation, rows 1:16 = geo_feat.

    # ---- direction encoding: tcnn SH takes (d+1)/2 and remaps to 2u-1 == d ----
    # SH rows are lane-dense (1, TN); f32 VPU math (v5e-safe).
    dx, dy, dz = d_ref[0:1, :], d_ref[1:2, :], d_ref[2:3, :]
    sh = _sh4_components(dx, dy, dz)

    # ---- color_net first layer as ONE (64,32)@(32,TN) MXU matmul ----
    # Assemble concat(sh, h2) in VMEM scratch (column 16 of wc0 is zero, so the
    # sigma channel of h2 does not contribute -> matches concat(sh, geo_feat)).
    for k in range(SH_DIM):
        cin_ref[k:k + 1, :] = sh[k]
    cin_ref[SH_DIM:SH_DIM + SIGMA_OUT, :] = h2
    cin = cin_ref[...].astype(bf16)                                            # (32, TN)

    c = jnp.maximum(jnp.dot(wc0_ref[...], cin, preferred_element_type=f32), 0.0)
    c = jnp.maximum(jnp.dot(wc1_ref[...], c.astype(bf16),
                            preferred_element_type=f32), 0.0)
    c = jnp.dot(wc2_ref[...], c.astype(bf16), preferred_element_type=f32)      # (3, TN)

    # ---- lane-dense combined output: row 0 sigma (trunc_exp fwd == exp), 1:4 color
    out_ref[0:1, :] = jnp.exp(h2[0:1, :])
    out_ref[1:4, :] = jax.nn.sigmoid(c)


def fused_heads(enc_x, d, exp, latent, p, tn=512):
    n = enc_x.shape[0]
    n_pad = ((n + tn - 1) // tn) * tn
    bf16 = jnp.bfloat16
    f32 = jnp.float32

    # Lane-dense transposed inputs (batch on the lane axis); pad N to tile size.
    encx_t = enc_x.T.astype(bf16)                                          # (32, N)
    d_t = d.T.astype(f32)                                                  # (3,  N)
    if n_pad != n:
        encx_t = jnp.pad(encx_t, ((0, 0), (0, n_pad - n)))
        d_t = jnp.pad(d_t, ((0, 0), (0, n_pad - n)))

    # Hoisted exp/latent "bias": concat(enc,exp,lat)@W0 == enc@W0x + exp@W0e + lat@W0l
    bias = (jnp.dot(exp.reshape(1, -1).astype(bf16), p['W0e'].astype(bf16),
                    preferred_element_type=f32)
            + jnp.dot(latent.reshape(1, -1).astype(bf16), p['W0l'].astype(bf16),
                      preferred_element_type=f32)).T                       # (64, 1) f32

    # Pre-transposed bf16 weights.
    w0  = p['W0x'].T.astype(bf16)                                          # (64, 32)
    w1  = p['W1'].T.astype(bf16)                                           # (64, 64)
    w2  = p['W2'].T.astype(bf16)                                           # (16, 64)
    wc0 = jnp.concatenate([p['Wc0d'], p['Wc0g']], axis=0).T.astype(bf16)   # (64, 32)
    wc1 = p['Wc1'].T.astype(bf16)                                          # (64, 64)
    wc2 = p['Wc2'].T.astype(bf16)                                          # (3, 64)

    def full(arr):
        return pl.BlockSpec(arr.shape, lambda i: (0, 0))

    flops_pp = 2 * (32 * 64 + 64 * 64 + 64 * 16 + 32 * 64 + 64 * 64 + 64 * 3)
    cost = pl.CostEstimate(
        flops=flops_pp * n_pad,
        transcendentals=4 * n_pad,
        bytes_accessed=n_pad * (ENC_DIM * 2 + 3 * 4 + 4 * 4) + 32 * 1024)

    out = pl.pallas_call(
        _heads_kernel,
        out_shape=jax.ShapeDtypeStruct((4, n_pad), f32),
        grid=(n_pad // tn,),
        in_specs=[pl.BlockSpec((ENC_DIM, tn), lambda i: (0, i)),
                  pl.BlockSpec((3, tn), lambda i: (0, i)),
                  full(bias),
                  full(w0), full(w1), full(w2),
                  full(wc0), full(wc1), full(wc2)],
        out_specs=pl.BlockSpec((4, tn), lambda i: (0, i)),
        scratch_shapes=[pltpu.VMEM((COLOR_IN, tn), f32)],
        compiler_params=pltpu.CompilerParams(dimension_semantics=("parallel",)),
        cost_estimate=cost,
    )(encx_t, d_t, bias, w0, w1, w2, wc0, wc1, wc2)

    sigma = out[0, :n]
    color = out[1:4, :n].T
    return sigma, color


def hashgrid_network_forward(x, d, exp, latent, params):
    x01 = (x + BOUND) / (2.0 * BOUND)
    enc_x = hash_grid_encode(x01, params['table'])
    return fused_heads(enc_x, d, exp, latent, params)


# --------------------------- pure-JAX reference ------------------------------
# Structurally matches the module; matmuls emulate the kernel's bf16-operand /
# f32-accumulate precision (tcnn reference itself runs fp16 internally).
def reference_heads(enc_x, d, exp, latent, p):
    bf = lambda a: a.astype(jnp.bfloat16)
    dot = lambda a, b: jnp.dot(bf(a), bf(b), preferred_element_type=jnp.float32)

    bias = dot(exp.reshape(1, -1), p['W0e']) + dot(latent.reshape(1, -1), p['W0l'])
    h = jnp.maximum(dot(enc_x, p['W0x']) + bias, 0.0)
    h = jnp.maximum(dot(h, p['W1']), 0.0)
    h = dot(h, p['W2'])
    sigma = jnp.exp(h[:, 0])

    dx, dy, dz = d[:, 0:1], d[:, 1:2], d[:, 2:3]
    sh = jnp.concatenate(_sh4_components(dx, dy, dz), axis=-1)             # (N, 16)
    cin = jnp.concatenate([sh, h], axis=-1)                                # (N, 32)
    Wc0 = jnp.concatenate([p['Wc0d'], p['Wc0g']], axis=0)                  # row 16 zeroed
    c = jnp.maximum(dot(cin, Wc0), 0.0)
    c = jnp.maximum(dot(c, p['Wc1']), 0.0)
    c = jax.nn.sigmoid(dot(c, p['Wc2']))
    return sigma, c


# ---------------------------------- main -------------------------------------
if __name__ == "__main__":
    key = jax.random.PRNGKey(0)
    k_p, k_x, k_d, k_e, k_l = jax.random.split(key, 5)

    params = init_params(k_p)

    N = 1024                      # 2 tiles of TN=512 -> exercises the parallel grid
    x = jax.random.uniform(k_x, (N, 3), jnp.float32, -BOUND, BOUND)
    d = jax.random.normal(k_d, (N, 3), jnp.float32)
    d = d / jnp.linalg.norm(d, axis=-1, keepdims=True)
    exp = jax.random.normal(k_e, (EXPRESSION_DIM,), jnp.float32)
    latent_code = jax.random.normal(k_l, (LATENT_CODE_DIM,), jnp.float32)

    sigma, color = hashgrid_network_forward(x, d, exp, latent_code, params)
    sigma, color = jax.block_until_ready((sigma, color))

    # sanity check against the pure-JAX reference (same hash encoding)
    x01 = (x + BOUND) / (2.0 * BOUND)
    enc_x = hash_grid_encode(x01, params['table'])
    sigma_ref, color_ref = reference_heads(enc_x, d, exp, latent_code, params)

    assert sigma.shape == (N,) and color.shape == (N, 3)
    np.testing.assert_allclose(np.asarray(sigma), np.asarray(sigma_ref),
                               rtol=2e-2, atol=2e-3)
    np.testing.assert_allclose(np.asarray(color), np.asarray(color_ref),
                               rtol=2e-2, atol=2e-3)

    print("KERNEL_OK")
</pallas_src>

<mosaic_0001>
module attributes {stable_mosaic.version = 11 : i64} {
  func.func @_heads_kernel(%arg0: i32, %arg1: memref<32x512xbf16, #tpu.memory_space<vmem>>, %arg2: memref<3x512xf32, #tpu.memory_space<vmem>>, %arg3: memref<64x1xf32, #tpu.memory_space<vmem>>, %arg4: memref<64x32xbf16, #tpu.memory_space<vmem>>, %arg5: memref<64x64xbf16, #tpu.memory_space<vmem>>, %arg6: memref<16x64xbf16, #tpu.memory_space<vmem>>, %arg7: memref<64x32xbf16, #tpu.memory_space<vmem>>, %arg8: memref<64x64xbf16, #tpu.memory_space<vmem>>, %arg9: memref<3x64xbf16, #tpu.memory_space<vmem>>, %arg10: memref<4x512xf32, #tpu.memory_space<vmem>>, %arg11: memref<32x512xf32, #tpu.memory_space<vmem>>) attributes {dimension_semantics = [#tpu.dimension_semantics<parallel>], iteration_bounds = array<i64: 2>, scalar_prefetch = 0 : i64, scratch_operands = 1 : i64, tpu.core_type = #tpu.core_type<tc>, window_params = [{transform_indices = @transform_0, window_bounds = array<i64: 32, 512>}, {transform_indices = @transform_1, window_bounds = array<i64: 3, 512>}, {pipeline_mode = #tpu.pipeline_mode<synchronous>, transform_indices = @transform_2, window_bounds = array<i64: 64, 1>}, {pipeline_mode = #tpu.pipeline_mode<synchronous>, transform_indices = @transform_3, window_bounds = array<i64: 64, 32>}, {pipeline_mode = #tpu.pipeline_mode<synchronous>, transform_indices = @transform_4, window_bounds = array<i64: 64, 64>}, {pipeline_mode = #tpu.pipeline_mode<synchronous>, transform_indices = @transform_5, window_bounds = array<i64: 16, 64>}, {pipeline_mode = #tpu.pipeline_mode<synchronous>, transform_indices = @transform_6, window_bounds = array<i64: 64, 32>}, {pipeline_mode = #tpu.pipeline_mode<synchronous>, transform_indices = @transform_7, window_bounds = array<i64: 64, 64>}, {pipeline_mode = #tpu.pipeline_mode<synchronous>, transform_indices = @transform_8, window_bounds = array<i64: 3, 64>}, {transform_indices = @transform_9, window_bounds = array<i64: 4, 512>}]} {
    %c0 = arith.constant 0 : index
    %c0_0 = arith.constant 0 : index
    %0 = vector.load %arg4[%c0, %c0_0] : memref<64x32xbf16, #tpu.memory_space<vmem>>, vector<64x32xbf16>
    %c0_1 = arith.constant 0 : index
    %c0_2 = arith.constant 0 : index
    %1 = vector.load %arg1[%c0_1, %c0_2] : memref<32x512xbf16, #tpu.memory_space<vmem>>, vector<32x512xbf16>
    %cst = arith.constant dense<0.000000e+00> : vector<64x512xf32>
    %2 = tpu.matmul %0, %1, %cst {dimension_numbers = #tpu.dot_dimension_numbers<[1], [0], [0], [1], [0, 0, 1, 1], [], []>} : vector<64x32xbf16>, vector<32x512xbf16>, vector<64x512xf32> -> vector<64x512xf32>
    %c0_3 = arith.constant 0 : index
    %c0_4 = arith.constant 0 : index
    %3 = vector.load %arg3[%c0_3, %c0_4] : memref<64x1xf32, #tpu.memory_space<vmem>>, vector<64x1xf32>
    %4 = vector.broadcast %3 : vector<64x1xf32> to vector<64x512xf32>
    %5 = arith.addf %2, %4 : vector<64x512xf32>
    %cst_5 = arith.constant 0.000000e+00 : f32
    %6 = vector.broadcast %cst_5 : f32 to vector<64x512xf32>
    %7 = arith.maximumf %5, %6 : vector<64x512xf32>
    %c0_6 = arith.constant 0 : index
    %c0_7 = arith.constant 0 : index
    %8 = vector.load %arg5[%c0_6, %c0_7] : memref<64x64xbf16, #tpu.memory_space<vmem>>, vector<64x64xbf16>
    %9 = arith.truncf %7 : vector<64x512xf32> to vector<64x512xbf16>
    %cst_8 = arith.constant dense<0.000000e+00> : vector<64x512xf32>
    %10 = tpu.matmul %8, %9, %cst_8 {dimension_numbers = #tpu.dot_dimension_numbers<[1], [0], [0], [1], [0, 0, 1, 1], [], []>} : vector<64x64xbf16>, vector<64x512xbf16>, vector<64x512xf32> -> vector<64x512xf32>
    %cst_9 = arith.constant 0.000000e+00 : f32
    %11 = vector.broadcast %cst_9 : f32 to vector<64x512xf32>
    %12 = arith.maximumf %10, %11 : vector<64x512xf32>
    %c0_10 = arith.constant 0 : index
    %c0_11 = arith.constant 0 : index
    %13 = vector.load %arg6[%c0_10, %c0_11] : memref<16x64xbf16, #tpu.memory_space<vmem>>, vector<16x64xbf16>
    %14 = arith.truncf %12 : vector<64x512xf32> to vector<64x512xbf16>
    %cst_12 = arith.constant dense<0.000000e+00> : vector<16x512xf32>
    %15 = tpu.matmul %13, %14, %cst_12 {dimension_numbers = #tpu.dot_dimension_numbers<[1], [0], [0], [1], [0, 0, 1, 1], [], []>} : vector<16x64xbf16>, vector<64x512xbf16>, vector<16x512xf32> -> vector<16x512xf32>
    %c0_13 = arith.constant 0 : index
    %c0_14 = arith.constant 0 : index
    %16 = vector.load %arg2[%c0_13, %c0_14] : memref<3x512xf32, #tpu.memory_space<vmem>>, vector<1x512xf32>
    %c1 = arith.constant 1 : index
    %c0_15 = arith.constant 0 : index
    %17 = vector.load %arg2[%c1, %c0_15] : memref<3x512xf32, #tpu.memory_space<vmem>>, vector<1x512xf32>
    %c2 = arith.constant 2 : index
    %c0_16 = arith.constant 0 : index
    %18 = vector.load %arg2[%c2, %c0_16] : memref<3x512xf32, #tpu.memory_space<vmem>>, vector<1x512xf32>
    %19 = arith.mulf %16, %16 : vector<1x512xf32>
    %20 = arith.mulf %17, %17 : vector<1x512xf32>
    %21 = arith.mulf %18, %18 : vector<1x512xf32>
    %22 = arith.mulf %16, %17 : vector<1x512xf32>
    %23 = arith.mulf %17, %18 : vector<1x512xf32>
    %24 = arith.mulf %16, %18 : vector<1x512xf32>
    %cst_17 = arith.constant 0.282094806 : f32
    %25 = vector.broadcast %cst_17 : f32 to vector<1x512xf32>
    %cst_18 = arith.constant -0.488602519 : f32
    %26 = vector.broadcast %cst_18 : f32 to vector<1x512xf32>
    %27 = arith.mulf %26, %17 : vector<1x512xf32>
    %cst_19 = arith.constant 0.488602519 : f32
    %28 = vector.broadcast %cst_19 : f32 to vector<1x512xf32>
    %29 = arith.mulf %28, %18 : vector<1x512xf32>
    %cst_20 = arith.constant -0.488602519 : f32
    %30 = vector.broadcast %cst_20 : f32 to vector<1x512xf32>
    %31 = arith.mulf %30, %16 : vector<1x512xf32>
    %cst_21 = arith.constant 1.09254849 : f32
    %32 = vector.broadcast %cst_21 : f32 to vector<1x512xf32>
    %33 = arith.mulf %32, %22 : vector<1x512xf32>
    %cst_22 = arith.constant -1.09254849 : f32
    %34 = vector.broadcast %cst_22 : f32 to vector<1x512xf32>
    %35 = arith.mulf %34, %23 : vector<1x512xf32>
    %cst_23 = arith.constant 0.946174681 : f32
    %36 = vector.broadcast %cst_23 : f32 to vector<1x512xf32>
    %37 = arith.mulf %36, %21 : vector<1x512xf32>
    %cst_24 = arith.constant 0.31539157 : f32
    %38 = vector.broadcast %cst_24 : f32 to vector<1x512xf32>
    %39 = arith.subf %37, %38 : vector<1x512xf32>
    %cst_25 = arith.constant -1.09254849 : f32
    %40 = vector.broadcast %cst_25 : f32 to vector<1x512xf32>
    %41 = arith.mulf %40, %24 : vector<1x512xf32>
    %42 = arith.subf %19, %20 : vector<1x512xf32>
    %cst_26 = arith.constant 0.546274245 : f32
    %43 = vector.broadcast %cst_26 : f32 to vector<1x512xf32>
    %44 = arith.mulf %43, %42 : vector<1x512xf32>
    %cst_27 = arith.constant 0.590043604 : f32
    %45 = vector.broadcast %cst_27 : f32 to vector<1x512xf32>
    %46 = arith.mulf %45, %17 : vector<1x512xf32>
    %cst_28 = arith.constant -3.000000e+00 : f32
    %47 = vector.broadcast %cst_28 : f32 to vector<1x512xf32>
    %48 = arith.mulf %47, %19 : vector<1x512xf32>
    %49 = arith.addf %48, %20 : vector<1x512xf32>
    %50 = arith.mulf %46, %49 : vector<1x512xf32>
    %cst_29 = arith.constant 2.89061141 : f32
    %51 = vector.broadcast %cst_29 : f32 to vector<1x512xf32>
    %52 = arith.mulf %51, %22 : vector<1x512xf32>
    %53 = arith.mulf %52, %18 : vector<1x512xf32>
    %cst_30 = arith.constant 0.457045794 : f32
    %54 = vector.broadcast %cst_30 : f32 to vector<1x512xf32>
    %55 = arith.mulf %54, %17 : vector<1x512xf32>
    %cst_31 = arith.constant 5.000000e+00 : f32
    %56 = vector.broadcast %cst_31 : f32 to vector<1x512xf32>
    %57 = arith.mulf %56, %21 : vector<1x512xf32>
    %cst_32 = arith.constant 1.000000e+00 : f32
    %58 = vector.broadcast %cst_32 : f32 to vector<1x512xf32>
    %59 = arith.subf %58, %57 : vector<1x512xf32>
    %60 = arith.mulf %55, %59 : vector<1x512xf32>
    %cst_33 = arith.constant 0.373176336 : f32
    %61 = vector.broadcast %cst_33 : f32 to vector<1x512xf32>
    %62 = arith.mulf %61, %18 : vector<1x512xf32>
    %cst_34 = arith.constant 5.000000e+00 : f32
    %63 = vector.broadcast %cst_34 : f32 to vector<1x512xf32>
    %64 = arith.mulf %63, %21 : vector<1x512xf32>
    %cst_35 = arith.constant 3.000000e+00 : f32
    %65 = vector.broadcast %cst_35 : f32 to vector<1x512xf32>
    %66 = arith.subf %64, %65 : vector<1x512xf32>
    %67 = arith.mulf %62, %66 : vector<1x512xf32>
    %cst_36 = arith.constant 0.457045794 : f32
    %68 = vector.broadcast %cst_36 : f32 to vector<1x512xf32>
    %69 = arith.mulf %68, %16 : vector<1x512xf32>
    %cst_37 = arith.constant 5.000000e+00 : f32
    %70 = vector.broadcast %cst_37 : f32 to vector<1x512xf32>
    %71 = arith.mulf %70, %21 : vector<1x512xf32>
    %cst_38 = arith.constant 1.000000e+00 : f32
    %72 = vector.broadcast %cst_38 : f32 to vector<1x512xf32>
    %73 = arith.subf %72, %71 : vector<1x512xf32>
    %74 = arith.mulf %69, %73 : vector<1x512xf32>
    %cst_39 = arith.constant 1.44530571 : f32
    %75 = vector.broadcast %cst_39 : f32 to vector<1x512xf32>
    %76 = arith.mulf %75, %18 : vector<1x512xf32>
    %77 = arith.subf %19, %20 : vector<1x512xf32>
    %78 = arith.mulf %76, %77 : vector<1x512xf32>
    %cst_40 = arith.constant 0.590043604 : f32
    %79 = vector.broadcast %cst_40 : f32 to vector<1x512xf32>
    %80 = arith.mulf %79, %16 : vector<1x512xf32>
    %cst_41 = arith.constant 0.000000e+00 : f32
    %81 = vector.broadcast %cst_41 : f32 to vector<1x512xf32>
    %82 = arith.subf %81, %19 : vector<1x512xf32>
    %cst_42 = arith.constant 3.000000e+00 : f32
    %83 = vector.broadcast %cst_42 : f32 to vector<1x512xf32>
    %84 = arith.mulf %83, %20 : vector<1x512xf32>
    %85 = arith.addf %82, %84 : vector<1x512xf32>
    %86 = arith.mulf %80, %85 : vector<1x512xf32>
    %c0_43 = arith.constant 0 : index
    %c0_44 = arith.constant 0 : index
    %87 = vector.load %arg11[%c0_43, %c0_44] : memref<32x512xf32, #tpu.memory_space<vmem>>, vector<1x512xf32>
    tpu.vector_store %arg11[%c0_43, %c0_44], %25 {strides = array<i32>} : memref<32x512xf32, #tpu.memory_space<vmem>>, vector<1x512xf32>,
    %c1_45 = arith.constant 1 : index
    %c0_46 = arith.constant 0 : index
    %88 = vector.load %arg11[%c1_45, %c0_46] : memref<32x512xf32, #tpu.memory_space<vmem>>, vector<1x512xf32>
    tpu.vector_store %arg11[%c1_45, %c0_46], %27 {strides = array<i32>} : memref<32x512xf32, #tpu.memory_space<vmem>>, vector<1x512xf32>,
    %c2_47 = arith.constant 2 : index
    %c0_48 = arith.constant 0 : index
    %89 = vector.load %arg11[%c2_47, %c0_48] : memref<32x512xf32, #tpu.memory_space<vmem>>, vector<1x512xf32>
    tpu.vector_store %arg11[%c2_47, %c0_48], %29 {strides = array<i32>} : memref<32x512xf32, #tpu.memory_space<vmem>>, vector<1x512xf32>,
    %c3 = arith.constant 3 : index
    %c0_49 = arith.constant 0 : index
    %90 = vector.load %arg11[%c3, %c0_49] : memref<32x512xf32, #tpu.memory_space<vmem>>, vector<1x512xf32>
    tpu.vector_store %arg11[%c3, %c0_49], %31 {strides = array<i32>} : memref<32x512xf32, #tpu.memory_space<vmem>>, vector<1x512xf32>,
    %c4 = arith.constant 4 : index
    %c0_50 = arith.constant 0 : index
    %91 = vector.load %arg11[%c4, %c0_50] : memref<32x512xf32, #tpu.memory_space<vmem>>, vector<1x512xf32>
    tpu.vector_store %arg11[%c4, %c0_50], %33 {strides = array<i32>} : memref<32x512xf32, #tpu.memory_space<vmem>>, vector<1x512xf32>,
    %c5 = arith.constant 5 : index
    %c0_51 = arith.constant 0 : index
    %92 = vector.load %arg11[%c5, %c0_51] : memref<32x512xf32, #tpu.memory_space<vmem>>, vector<1x512xf32>
    tpu.vector_store %arg11[%c5, %c0_51], %35 {strides = array<i32>} : memref<32x512xf32, #tpu.memory_space<vmem>>, vector<1x512xf32>,
    %c6 = arith.constant 6 : index
    %c0_52 = arith.constant 0 : index
    %93 = vector.load %arg11[%c6, %c0_52] : memref<32x512xf32, #tpu.memory_space<vmem>>, vector<1x512xf32>
    tpu.vector_store %arg11[%c6, %c0_52], %39 {strides = array<i32>} : memref<32x512xf32, #tpu.memory_space<vmem>>, vector<1x512xf32>,
    %c7 = arith.constant 7 : index
    %c0_53 = arith.constant 0 : index
    %94 = vector.load %arg11[%c7, %c0_53] : memref<32x512xf32, #tpu.memory_space<vmem>>, vector<1x512xf32>
    tpu.vector_store %arg11[%c7, %c0_53], %41 {strides = array<i32>} : memref<32x512xf32, #tpu.memory_space<vmem>>, vector<1x512xf32>,
    %c8 = arith.constant 8 : index
    %c0_54 = arith.constant 0 : index
    %95 = vector.load %arg11[%c8, %c0_54] : memref<32x512xf32, #tpu.memory_space<vmem>>, vector<1x512xf32>
    tpu.vector_store %arg11[%c8, %c0_54], %44 {strides = array<i32>} : memref<32x512xf32, #tpu.memory_space<vmem>>, vector<1x512xf32>,
    %c9 = arith.constant 9 : index
    %c0_55 = arith.constant 0 : index
    %96 = vector.load %arg11[%c9, %c0_55] : memref<32x512xf32, #tpu.memory_space<vmem>>, vector<1x512xf32>
    tpu.vector_store %arg11[%c9, %c0_55], %50 {strides = array<i32>} : memref<32x512xf32, #tpu.memory_space<vmem>>, vector<1x512xf32>,
    %c10 = arith.constant 10 : index
    %c0_56 = arith.constant 0 : index
    %97 = vector.load %arg11[%c10, %c0_56] : memref<32x512xf32, #tpu.memory_space<vmem>>, vector<1x512xf32>
    tpu.vector_store %arg11[%c10, %c0_56], %53 {strides = array<i32>} : memref<32x512xf32, #tpu.memory_space<vmem>>, vector<1x512xf32>,
    %c11 = arith.constant 11 : index
    %c0_57 = arith.constant 0 : index
    %98 = vector.load %arg11[%c11, %c0_57] : memref<32x512xf32, #tpu.memory_space<vmem>>, vector<1x512xf32>
    tpu.vector_store %arg11[%c11, %c0_57], %60 {strides = array<i32>} : memref<32x512xf32, #tpu.memory_space<vmem>>, vector<1x512xf32>,
    %c12 = arith.constant 12 : index
    %c0_58 = arith.constant 0 : index
    %99 = vector.load %arg11[%c12, %c0_58] : memref<32x512xf32, #tpu.memory_space<vmem>>, vector<1x512xf32>
    tpu.vector_store %arg11[%c12, %c0_58], %67 {strides = array<i32>} : memref<32x512xf32, #tpu.memory_space<vmem>>, vector<1x512xf32>,
    %c13 = arith.constant 13 : index
    %c0_59 = arith.constant 0 : index
    %100 = vector.load %arg11[%c13, %c0_59] : memref<32x512xf32, #tpu.memory_space<vmem>>, vector<1x512xf32>
    tpu.vector_store %arg11[%c13, %c0_59], %74 {strides = array<i32>} : memref<32x512xf32, #tpu.memory_space<vmem>>, vector<1x512xf32>,
    %c14 = arith.constant 14 : index
    %c0_60 = arith.constant 0 : index
    %101 = vector.load %arg11[%c14, %c0_60] : memref<32x512xf32, #tpu.memory_space<vmem>>, vector<1x512xf32>
    tpu.vector_store %arg11[%c14, %c0_60], %78 {strides = array<i32>} : memref<32x512xf32, #tpu.memory_space<vmem>>, vector<1x512xf32>,
    %c15 = arith.constant 15 : index
    %c0_61 = arith.constant 0 : index
    %102 = vector.load %arg11[%c15, %c0_61] : memref<32x512xf32, #tpu.memory_space<vmem>>, vector<1x512xf32>
    tpu.vector_store %arg11[%c15, %c0_61], %86 {strides = array<i32>} : memref<32x512xf32, #tpu.memory_space<vmem>>, vector<1x512xf32>,
    %c16 = arith.constant 16 : index
    %c0_62 = arith.constant 0 : index
    %103 = vector.load %arg11[%c16, %c0_62] : memref<32x512xf32, #tpu.memory_space<vmem>>, vector<16x512xf32>
    tpu.vector_store %arg11[%c16, %c0_62], %15 {strides = array<i32>} : memref<32x512xf32, #tpu.memory_space<vmem>>, vector<16x512xf32>,
    %c0_63 = arith.constant 0 : index
    %c0_64 = arith.constant 0 : index
    %104 = vector.load %arg11[%c0_63, %c0_64] : memref<32x512xf32, #tpu.memory_space<vmem>>, vector<32x512xf32>
    %105 = arith.truncf %104 : vector<32x512xf32> to vector<32x512xbf16>
    %c0_65 = arith.constant 0 : index
    %c0_66 = arith.constant 0 : index
    %106 = vector.load %arg7[%c0_65, %c0_66] : memref<64x32xbf16, #tpu.memory_space<vmem>>, vector<64x32xbf16>
    %cst_67 = arith.constant dense<0.000000e+00> : vector<64x512xf32>
    %107 = tpu.matmul %106, %105, %cst_67 {dimension_numbers = #tpu.dot_dimension_numbers<[1], [0], [0], [1], [0, 0, 1, 1], [], []>} : vector<64x32xbf16>, vector<32x512xbf16>, vector<64x512xf32> -> vector<64x512xf32>
    %cst_68 = arith.constant 0.000000e+00 : f32
    %108 = vector.broadcast %cst_68 : f32 to vector<64x512xf32>
    %109 = arith.maximumf %107, %108 : vector<64x512xf32>
    %c0_69 = arith.constant 0 : index
    %c0_70 = arith.constant 0 : index
    %110 = vector.load %arg8[%c0_69, %c0_70] : memref<64x64xbf16, #tpu.memory_space<vmem>>, vector<64x64xbf16>
    %111 = arith.truncf %109 : vector<64x512xf32> to vector<64x512xbf16>
    %cst_71 = arith.constant dense<0.000000e+00> : vector<64x512xf32>
    %112 = tpu.matmul %110, %111, %cst_71 {dimension_numbers = #tpu.dot_dimension_numbers<[1], [0], [0], [1], [0, 0, 1, 1], [], []>} : vector<64x64xbf16>, vector<64x512xbf16>, vector<64x512xf32> -> vector<64x512xf32>
    %cst_72 = arith.constant 0.000000e+00 : f32
    %113 = vector.broadcast %cst_72 : f32 to vector<64x512xf32>
    %114 = arith.maximumf %112, %113 : vector<64x512xf32>
    %c0_73 = arith.constant 0 : index
    %c0_74 = arith.constant 0 : index
    %115 = vector.load %arg9[%c0_73, %c0_74] : memref<3x64xbf16, #tpu.memory_space<vmem>>, vector<3x64xbf16>
    %116 = arith.truncf %114 : vector<64x512xf32> to vector<64x512xbf16>
    %cst_75 = arith.constant dense<0.000000e+00> : vector<3x512xf32>
    %117 = tpu.matmul %115, %116, %cst_75 {dimension_numbers = #tpu.dot_dimension_numbers<[1], [0], [0], [1], [0, 0, 1, 1], [], []>} : vector<3x64xbf16>, vector<64x512xbf16>, vector<3x512xf32> -> vector<3x512xf32>
    %118 = vector.extract_strided_slice %15 {offsets = [0, 0], sizes = [1, 512], strides = [1, 1]} : vector<16x512xf32> to vector<1x512xf32>
    %119 = math.exp %118 : vector<1x512xf32>
    %c0_76 = arith.constant 0 : index
    %c0_77 = arith.constant 0 : index
    %120 = vector.load %arg10[%c0_76, %c0_77] : memref<4x512xf32, #tpu.memory_space<vmem>>, vector<1x512xf32>
    tpu.vector_store %arg10[%c0_76, %c0_77], %119 {strides = array<i32>} : memref<4x512xf32, #tpu.memory_space<vmem>>, vector<1x512xf32>,
    %121 = arith.negf %117 : vector<3x512xf32>
    %122 = math.exp %121 : vector<3x512xf32>
    %cst_78 = arith.constant 1.000000e+00 : f32
    %123 = vector.broadcast %cst_78 : f32 to vector<3x512xf32>
    %124 = arith.addf %123, %122 : vector<3x512xf32>
    %125 = arith.divf %123, %124 : vector<3x512xf32>
    %c1_79 = arith.constant 1 : index
    %c0_80 = arith.constant 0 : index
    %126 = vector.load %arg10[%c1_79, %c0_80] : memref<4x512xf32, #tpu.memory_space<vmem>>, vector<3x512xf32>
    tpu.vector_store %arg10[%c1_79, %c0_80], %125 {strides = array<i32>} : memref<4x512xf32, #tpu.memory_space<vmem>>, vector<3x512xf32>,
    return
  }
  func.func @transform_0(%arg0: i32) -> (i32, i32) {
    %c0_i32 = arith.constant 0 : i32
    %c0_i32_0 = arith.constant 0 : i32
    return %c0_i32, %arg0 : i32, i32
  }
  func.func @transform_1(%arg0: i32) -> (i32, i32) {
    %c0_i32 = arith.constant 0 : i32
    %c0_i32_0 = arith.constant 0 : i32
    return %c0_i32, %arg0 : i32, i32
  }
  func.func @transform_2(%arg0: i32) -> (i32, i32) {
    %c0_i32 = arith.constant 0 : i32
    %c0_i32_0 = arith.constant 0 : i32
    %c0_i32_1 = arith.constant 0 : i32
    return %c0_i32, %c0_i32_0 : i32, i32
  }
  func.func @transform_3(%arg0: i32) -> (i32, i32) {
    %c0_i32 = arith.constant 0 : i32
    %c0_i32_0 = arith.constant 0 : i32
    %c0_i32_1 = arith.constant 0 : i32
    return %c0_i32, %c0_i32_0 : i32, i32
  }
  func.func @transform_4(%arg0: i32) -> (i32, i32) {
    %c0_i32 = arith.constant 0 : i32
    %c0_i32_0 = arith.constant 0 : i32
    %c0_i32_1 = arith.constant 0 : i32
    return %c0_i32, %c0_i32_0 : i32, i32
  }
  func.func @transform_5(%arg0: i32) -> (i32, i32) {
    %c0_i32 = arith.constant 0 : i32
    %c0_i32_0 = arith.constant 0 : i32
    %c0_i32_1 = arith.constant 0 : i32
    return %c0_i32, %c0_i32_0 : i32, i32
  }
  func.func @transform_6(%arg0: i32) -> (i32, i32) {
    %c0_i32 = arith.constant 0 : i32
    %c0_i32_0 = arith.constant 0 : i32
    %c0_i32_1 = arith.constant 0 : i32
    return %c0_i32, %c0_i32_0 : i32, i32
  }
  func.func @transform_7(%arg0: i32) -> (i32, i32) {
    %c0_i32 = arith.constant 0 : i32
    %c0_i32_0 = arith.constant 0 : i32
    %c0_i32_1 = arith.constant 0 : i32
    return %c0_i32, %c0_i32_0 : i32, i32
  }
  func.func @transform_8(%arg0: i32) -> (i32, i32) {
    %c0_i32 = arith.constant 0 : i32
    %c0_i32_0 = arith.constant 0 : i32
    %c0_i32_1 = arith.constant 0 : i32
    return %c0_i32, %c0_i32_0 : i32, i32
  }
  func.func @transform_9(%arg0: i32) -> (i32, i32) {
    %c0_i32 = arith.constant 0 : i32
    %c0_i32_0 = arith.constant 0 : i32
    return %c0_i32, %arg0 : i32, i32
  }
}

</mosaic_0001>

<bundles_post_ra>
// kernel: tpu_custom_call.1
= control target key start
LH: loop header
LB: loop body
LE: loop exit
PB: predicated region body
PF: predicated region fallthrough
CT: control target
= control target key end

     0   :  { %s2861_s0 = inlined_call_operand.vmem [shape: bf16[32,1024], index: 0, kind: input, shape index: {}]   ;;  %s2862_s1 = inlined_call_operand.vmem [shape: f32[3,1024], index: 1, kind: input, shape index: {}]   ;;  %s2863_s2 = inlined_call_operand.vmem [shape: f32[64,1], index: 2, kind: input, shape index: {}]   ;;  %s2864_s3 = inlined_call_operand.vmem [shape: bf16[64,32], index: 3, kind: input, shape index: {}]   ;;  %s2865_s4 = inlined_call_operand.hbm [shape: bf16[64,64], index: 4, kind: input, shape index: {}]   ;;  %s2866_s5 = inlined_call_operand.hbm [shape: bf16[16,64], index: 5, kind: input, shape index: {}]   ;;  %s2867_s6 = inlined_call_operand.vmem [shape: bf16[64,32], index: 6, kind: input, shape index: {}]   ;;  %s2868_s7 = inlined_call_operand.hbm [shape: bf16[64,64], index: 7, kind: input, shape index: {}]   ;;  %s2869_s8 = inlined_call_operand.vmem [shape: bf16[3,64], index: 8, kind: input, shape index: {}]   ;;  %s2870_s9 = inlined_call_operand.hbm [shape: f32[4,1024], index: 9, kind: output, shape index: {}]  }
   0x1   :  { %2873 = sst [smem:[#allocation16_spill]] %s2865_s4 }
   0x2   :  { %2874 = sst [smem:[#allocation17_spill]] %s2866_s5 }
   0x3   :  { %14 = vsyncpa [#allocation5], 0 }
   0x4   :  { %15 = vsyncpa [#allocation8], 0 }
   0x5   :  { %16 = vsyncpa [#allocation6], 0 }
   0x6   :  { %18 = vsyncpa [#allocation6 + $0x1], 0  ;;  %s2390_s30 = smov 0   ;;  %s2392_s10 = smov 0  }
   0x7   :  { %s2394_s11 = smov 0   ;;  %s2396_s12 = smov 0  }
   0x8 LB: > { %s2411_s13 = sadd.s32 4294967295, %s2331_s12   ;;  %s1841_s14 = sadd.s32 4294967294, %s2331_s12   ;;  %s2331_s12 = sphi %s2396_s12, %s2886_s12   ;;  %s2327_s11 = sphi %s2394_s11, %s2890_s11   ;;  %s2323_s10 = sphi %s2392_s10, %s2889_s10   ;;  %s2319_s30 = sphi %s2390_s30, %s2888_s30  }
   0x9   : > { %s2415_s15 = sadd.s32 1, %s2331_s12   ;;  %s31_s16 = sadd.s32 1, %s2327_s11 }
   0xa   : > { %2875 = sst [smem:[#allocation14_spill]] %s2415_s15  ;;  %s28_s17 = ssub.s32 %s2331_s12, %s2415_s15 }
   0xb   : > { %p38_p0 = scmp.ne.s32.totalorder %s2327_s11, %s2323_s10  ;;  %p29_p1 = scmp.eq.s32.totalorder %s28_s17, 0 }
   0xc   : > { %p39_p2 = scmp.eq.s32.totalorder %s2331_s12, 0  ;;  %p241_p3 = scmp.eq.s32.totalorder %s2411_s13, 1 }
   0xd   : > { %p246_p4 = scmp.ne.s32.totalorder %s2323_s10, %s2319_s30  ;;  %p247_p7 = scmp.eq.s32.totalorder %s1841_s14, 1 }
   0xe   : > { %s2427_s18 = scalar_select %p29_p1, %s2327_s11, %s31_s16  }
   0xf   : > { %p2429_p5 = por %p39_p2, %p38_p0  ;;  %p2433_p6 = por %p241_p3, %p38_p0 }
  0x10   : > { %2876 = sst [smem:[#allocation15_spill]] %s2427_s18  ;;  %p1842_p8 = scmp.ge.s32.totalorder %s2331_s12, 1 }
  0x11   : > { %p254_p9 = scmp.lt.s32.totalorder %s2331_s12, 3  ;;  %p2439_p10 = por %p247_p7, %p246_p4 }
  0x12   : > { %p2098_p11 = scmp.eq.s32.totalorder %s2411_s13, 0  ;;  %s2881_s5 = sld [smem:[#allocation17_spill]] }
  0x13   : > { %p2444_p12 = pnand %p1842_p8, %p254_p9  ;;  %s2882_s4 = sld [smem:[#allocation16_spill]] }
  0x14   : > { %s2333_s14 = smov [#allocation7]   ;;  %s2334_s17 = smov 64  }
  0x15   : > { %p2084_p13 = pneg %p2444_p12  ;;  %s287_s16 = sshll.u32 %s2333_s14, 4  ;;  %s288_s16 = int_to_ptr.vmem [resolvable:$true] %s287_s16 }
  0x16   : > { %s2335_s23 = smov 4   ;;  %s2336_s24 = smov [#allocation4]  }
  0x17   : > { %p2458_p0 = pnand %p2098_p11, %p2084_p13  ;;  %s2337_s18 = smov [#allocation9]  }
  0x18   : > { %s285_s25 = sshll.u32 %s2881_s5, 4  ;;  %s273_s5 = sshll.u32 %s2336_s24, 4  ;;  %s286_s25 = int_to_ptr.hbm [resolvable:$true] %s285_s25  ;;  %s274_s5 = int_to_ptr.vmem [resolvable:$true] %s273_s5 }
  0x19   : > { %s271_s28 = sshll.u32 %s2882_s4, 4  ;;  %s302_s4 = sshll.u32 %s2868_s7, 4  ;;  %s272_s28 = int_to_ptr.hbm [resolvable:$true] %s271_s28  ;;  %s303_s4 = int_to_ptr.hbm [resolvable:$true] %s302_s4 }
  0x1a   : > { %2090 = dma.hbm_to_vmem [thread:$0]  (!%p2458_p0), %s286_s25, 128, %s288_s16, [#allocation8], %s2334_s17, %s2334_s17, %s2335_s23  }
  0x1b   : > { %2087 = dma.hbm_to_vmem [thread:$0]  (!%p2458_p0), %s272_s28, 512, %s274_s5, [#allocation5], %s2334_s17, %s2334_s17, %s2335_s23  }
  0x1c   : > { %s304_s15 = sshll.u32 %s2337_s18, 4  ;;  %p1846_p1 = scmp.ge.s32.totalorder %s2331_s12, 2  ;;  %s305_s15 = int_to_ptr.vmem [resolvable:$true] %s304_s15 }
  0x1d   : > { %2093 = dma.hbm_to_vmem [thread:$0]  (!%p2458_p0), %s303_s4, 512, %s305_s15, [#allocation8], %s2334_s17, %s2334_s17, %s2335_s23  }
  0x1e   : > { %317 = sbr.rel (%p1846_p1) target bundleno = 47 (0x2f), region = 44 }
  0x23   : > { %320 = sbr.rel (!%p2429_p5) target bundleno = 47 (0x2f), region = 48  ;;  %s322_s25 = sand.u32 (%p2429_p5), 1, %s2327_s11  }
  0x24   : > { %s2043_s14 = sshll.u32 (%p2429_p5), %s2331_s12, 4  ;;  %s1847_s16 = sshll.u32 (%p2429_p5), %s322_s25, 6 }
  0x25   : > { %s327_s18 = scalar_lea.vmem (%p2429_p5), %s2861_s0, %s2043_s14  ;;  %s324_s4 = scalar_lea.vmem (%p2429_p5), [#allocation3], %s1847_s16 }
  0x26   : > { %v340_v0 = vld [vmem:[%s327_s18] sm:$0xff] (%p2429_p5)  ;;  %v342_v1 = vld [vmem:[%s327_s18 + $0x8] sm:$0xff] (%p2429_p5) }
  0x27   : > { %v344_v2 = vld [vmem:[%s327_s18 + $0x20] sm:$0xff] (%p2429_p5)  ;;  %341 = vst [vmem:[%s324_s4] sm:$0xff] (%p2429_p5), %v340_v0  ;;  %v346_v3 = vld [vmem:[%s327_s18 + $0x28] sm:$0xff] (%p2429_p5) }
  0x28   : > { %343 = vst [vmem:[%s324_s4 + $0x8] sm:$0xff] %v342_v1  ;;  %v348_v4 = vld [vmem:[%s327_s18 + $0x40] sm:$0xff]  ;;  %v350_v5 = vld [vmem:[%s327_s18 + $0x48] sm:$0xff] }
  0x29   : > { %345 = vst [vmem:[%s324_s4 + $0x10] sm:$0xff] %v344_v2  ;;  %v352_v6 = vld [vmem:[%s327_s18 + $0x60] sm:$0xff]  ;;  %v354_v7 = vld [vmem:[%s327_s18 + $0x68] sm:$0xff] }
  0x2a   : > { %347 = vst [vmem:[%s324_s4 + $0x18] sm:$0xff] %v346_v3 }
  0x2b   : > { %349 = vst [vmem:[%s324_s4 + $0x20] sm:$0xff] %v348_v4 }
  0x2c   : > { %351 = vst [vmem:[%s324_s4 + $0x28] sm:$0xff] %v350_v5 }
  0x2d   : > { %353 = vst [vmem:[%s324_s4 + $0x30] sm:$0xff] %v352_v6 }
  0x2e   : > { %355 = vst [vmem:[%s324_s4 + $0x38] sm:$0xff] %v354_v7 }
  0x2f PF: > { %373 = sbr.rel (%p2444_p12) target bundleno = 1215 (0x4bf), region = 75  ;;  %s2484_s15 = sand.u32 (!%p2444_p12), 1, %s2323_s10  }
  0x30   : > { %s1851_s19 = sshll.u32 (!%p2444_p12), %s2484_s15, 6 }
  0x31   : > { %s2487_s29 = scalar_lea.vmem (!%p2444_p12), [#allocation3], %s1851_s19 }
  0x34   : > { %2306 = dma.done.wait (%p2098_p11), [#allocation5], 512  }
  0x35   : > { %2308 = vsyncadd (%p2098_p11), [#allocation5], 4294966784 }
  0x36   : > { %2310 = dma.done.wait (%p2098_p11), [#allocation8], 640  }
  0x37   : > { %2312 = vsyncadd (%p2098_p11), [#allocation8], 4294966656  ;;  %v2338_v8 = vmov 0   ;;  %v1892_v9 = vld [vmem:[%s2487_s29 + $0x20] sm:$0xf]  ;;  %v462_v32 = vld [vmem:[%s2863_s2 + $0x30] sm:$0xff] }
  0x38   : > { %2144 = vset.pattern.permute.xlu0 %v2338_v8  ;;  %2145 = vset.pattern.permute.xlu1 %v2338_v8  ;;  %v2054_v10 = vld [vmem:[%s2487_s29 + $0x2c] sm:$0xf0]  ;;  %v2052_v11 = vld [vmem:[%s2487_s29 + $0x24] sm:$0xf]  ;;  %v1894_v13 = vld [vmem:[%s2487_s29 + $0x30] sm:$0xf0] }
  0x39   : > { %2146 = vset.pattern.permute.xlu2 %v2338_v8  ;;  %v1893_v12 = vor.u32 %v2054_v10, %v1892_v9  ;;  %v1900_v14 = vld [vmem:[%s2487_s29 + $0x28] sm:$0xf]  ;;  %v2055_v15 = vld [vmem:[%s2487_s29 + $0x34] sm:$0xf0]  ;;  %v1897_v16 = vor.u32 %v2052_v11, %v1894_v13  ;;  %v2053_v18 = vld [vmem:[%s2487_s29 + $0x2c] sm:$0xf]  ;;  %496 = vperm.xlu0 %2144, %v462_v32  }
  0x3a   : > { %v1901_v17 = vor.u32 %v2055_v15, %v1900_v14  ;;  %v1902_v19 = vld [vmem:[%s2487_s29 + $0x38] sm:$0xf0]  ;;  %v1876_v20 = vld [vmem:[%s2487_s29] sm:$0xf]  ;;  %v2050_v22 = vld [vmem:[%s2487_s29 + $0xc] sm:$0xf0] }
  0x3b   : > { %583 = vmatpush.bf16.msra.mxu0 %v1893_v12  ;;  %v1905_v21 = vor.u32 %v2053_v18, %v1902_v19  ;;  %v2048_v23 = vld [vmem:[%s2487_s29 + $0x4] sm:$0xf]  ;;  %v1878_v24 = vld [vmem:[%s2487_s29 + $0x10] sm:$0xf0]  ;;  %612 = vmatpush.bf16.msra.mxu1 %v1897_v16  ;;  %v1877_v25 = vor.u32 %v2050_v22, %v1876_v20  ;;  %v1884_v27 = vld [vmem:[%s2487_s29 + $0x8] sm:$0xf] }
  0x3c   : > { %641 = vmatpush.bf16.msra.mxu2 %v1901_v17  ;;  %v1881_v26 = vor.u32 %v2048_v23, %v1878_v24  ;;  %v2051_v28 = vld [vmem:[%s2487_s29 + $0x14] sm:$0xf0]  ;;  %v2049_v29 = vld [vmem:[%s2487_s29 + $0xc] sm:$0xf]  ;;  %v1886_v31 = vld [vmem:[%s2487_s29 + $0x18] sm:$0xf0] }
  0x3d   : > { %670 = vmatpush.bf16.msra.mxu3 %v1905_v21  ;;  %v1885_v30 = vor.u32 %v2051_v28, %v1884_v27  ;;  %v1889_v33 = vor.u32 %v2049_v29, %v1886_v31  ;;  %v2044_v34 = vld [vmem:[%s2864_s3] sm:$0xff]  ;;  %vm564_vm0 = vcmask 261120   ;;  %v463_v36 = vld [vmem:[%s2863_s2 + $0x38] sm:$0xff]  ;;  %v461_v37 = vld [vmem:[%s2863_s2 + $0x28] sm:$0xff]  ;;  %vm769_vm1 = vcmask 523264   ;;  %s1856_s5 = sshll.u32 %s2411_s13, 2 }
  0x3e   : > { %v460_v35 = vld [vmem:[%s2863_s2 + $0x20] sm:$0xff]  ;;  %v457_v39 = vld [vmem:[%s2863_s2 + $0x8] sm:$0xff]  ;;  %v458_v41 = vld [vmem:[%s2863_s2 + $0x10] sm:$0xff]  ;;  %p433_p2 = scmp.lt.s32.totalorder %s1856_s5, 7  ;;  %vm1617_vm3 = vcmask 1040384   ;;  %s1855_s17 = sshll.u32 %s2484_s15, 4 }
  0x3f   : > { %584 = vmatpush.bf16.msra.mxu0 %v1877_v25  ;;  %486 = vperm.xlu1 %2145, %v460_v35   ;;  %v456_v38 = vld [vmem:[%s2863_s2] sm:$0xff]  ;;  %v2045_v40 = vld [vmem:[%s2864_s3 + $0x8] sm:$0xff]  ;;  %v459_v42 = vld [vmem:[%s2863_s2 + $0x18] sm:$0xff]  ;;  %vm1619_vm4 = vcmask 1042434   ;;  %vm1621_vm5 = vcmask 1041408   ;;  %s2728_s26 = scalar_lea.vmem [#allocation10], %s1855_s17 }
  0x40   : > { %613 = vmatpush.bf16.msra.mxu1 %v1881_v26  ;;  %642 = vmatpush.bf16.msra.mxu2 %v1885_v30  ;;  %v2046_v43 = vld [vmem:[%s2864_s3 + $0x10] sm:$0xff]  ;;  %v2047_v44 = vld [vmem:[%s2864_s3 + $0x18] sm:$0xff]  ;;  %s2892_s5 = smov (!%p433_p2, %s1856_s5), 7  ;;  %vm1707_vm14 = vcmask 1043456   ;;  %s2069_s18 = sshll.u32 %s2411_s13, 4 }
  0x41   : > { %671 = vmatpush.bf16.msra.mxu3 %v1889_v33  ;;  %501 = vperm.xlu0 %2144, %v463_v36   ;;  %s1857_s28 = sshll.u32 %s2892_s5, 2  ;;  %s1728_s29 = scalar_lea.hbm %s2870_s9, %s2069_s18 }
  0x42   : > { %1906 = vmatmul.msk.bf16.vlgmr.msra.gmra.mxu0 %vm564_vm0, %v2044_v34  ;;  %476 = vperm.xlu2 %2146, %v458_v41   ;;  %s436_s19 = scalar_lea.vmem %s2862_s1, %s1857_s28  ;;  %s1730_s13 = sshll.u32 %s2728_s26, 4  ;;  %s1731_s13 = int_to_ptr.vmem [resolvable:$true] %s1730_s13 }
  0x43   : > { %1910 = vmatmul.msk.bf16.vlgmr.msra.gmra.mxu1 %vm564_vm0, %v2044_v34  ;;  %1914 = vmatmul.msk.bf16.vlgmr.msra.gmra.mxu2 %vm564_vm0, %v2044_v34  ;;  %s1732_s22 = sshll.u32 %s1728_s29, 4  ;;  %s1717_s17 = scalar_lea.sflag [#allocation6], %s2484_s15  ;;  %s1733_s22 = int_to_ptr.hbm [resolvable:$true] %s1732_s22 }
  0x44   : > { %1918 = vmatmul.msk.bf16.vlgmr.msra.gmra.mxu3 %vm564_vm0, %v2044_v34  ;;  %s2275_s23 = sshra.s32 %s1733_s22, 4  ;;  %s2281_s14 = scalar_lea.hbm %s2870_s9, 32  ;;  %s2276_s23 = int_to_ptr.hbm [resolvable:$true] %s2275_s23 }
  0x45   : > { %s2277_s24 = scalar_lea.hbm %s2276_s23, 16  ;;  %p2282_p7 = scmp.lt.s32.totalorder %s2276_s23, %s2870_s9 }
  0x46   : > { %p2278_p3 = scmp.ne.s32.totalorder %s2276_s23, %s2277_s24  ;;  %p2283_p8 = scmp.lt.s32.totalorder %s2281_s14, %s2277_s24 }
  0x47   : > { %491 = vperm.xlu1 %2145, %v461_v37  }
  0x48   : > { %p2279_p4 = pnand %p2278_p3, %p2433_p6  ;;  %p2284_p9 = por %p2283_p8, %p2282_p7 }
  0x49   : > { %466 = vperm.xlu0 %2144, %v456_v38  }
  0x4a   : > { %481 = vperm.xlu2 %2146, %v459_v42   ;;  %p2280_p5 = pneg %p2279_p4 }
  0x4c   : > { %p2285_p11 = pnand %p2284_p9, %p2280_p5 }
  0x4f   : > { %471 = vperm.xlu1 %2145, %v457_v39  }
  0x52   : > { %1907 = vmatmul.msk.bf16.gmra.mxu0 %vm564_vm0, %v2045_v40 }
  0x53   : > { %1911 = vmatmul.msk.bf16.gmra.mxu1 %vm564_vm0, %v2045_v40  ;;  %1915 = vmatmul.msk.bf16.gmra.mxu2 %vm564_vm0, %v2045_v40 }
  0x54   : > { %1919 = vmatmul.msk.bf16.gmra.mxu3 %vm564_vm0, %v2045_v40 }
  0x62   : > { %1908 = vmatmul.msk.bf16.gmra.mxu0 %vm564_vm0, %v2046_v43 }
  0x63   : > { %1912 = vmatmul.msk.bf16.gmra.mxu1 %vm564_vm0, %v2046_v43  ;;  %1916 = vmatmul.msk.bf16.gmra.mxu2 %vm564_vm0, %v2046_v43 }
  0x64   : > { %1920 = vmatmul.msk.bf16.gmra.mxu3 %vm564_vm0, %v2046_v43 }
  0x72   : > { %1909 = vmatmul.msk.bf16.gmra.mxu0 %vm564_vm0, %v2047_v44 }
  0x73   : > { %1913 = vmatmul.msk.bf16.gmra.mxu1 %vm564_vm0, %v2047_v44  ;;  %1917 = vmatmul.msk.bf16.gmra.mxu2 %vm564_vm0, %v2047_v44 }
  0x74   : > { %1921 = vmatmul.msk.bf16.gmra.mxu3 %vm564_vm0, %v2047_v44 }
  0x9c   : > { %v2585_v10 = vpop.permute.xlu2 %476 }
  0xa4   : > { %v482_v29 = vpop.permute.xlu2 %481 }
  0xab   : > { %v497_v63 = vpop.permute.xlu0 %496 }
  0xb1   : > { %v2581_v0 = vpop.permute.xlu1 %486 }
  0xb3   : > { %v502_v5 = vpop.permute.xlu0 %501 }
  0xb9   : > { %v492_v6 = vpop.permute.xlu1 %491 }
  0xbb   : > { %v2587_v12 = vpop.permute.xlu0 %466 }
  0xbf   : > { %v586_v45 = vpop.f32.mrf.mxu0 }
  0xc0   : > { %v615_v46 = vpop.f32.mrf.mxu1  ;;  %v2590_v18 = vadd.f32 %v586_v45, %v2587_v12 }
  0xc1   : > { %v2594_v23 = vadd.f32 %v615_v46, %v2587_v12  ;;  %v2596_v24 = vpop.permute.xlu1 %471 }
  0xc6   : > { %v2565_v47 = vpop.f32.mrf.mxu2 }
  0xc7   : > { %v2567_v48 = vpop.f32.mrf.mxu3  ;;  %v588_v49 = vpop.f32.mrf.mxu0 }
  0xc8   : > { %v617_v50 = vpop.f32.mrf.mxu1  ;;  %v2600_v28 = vadd.f32 %v588_v49, %v2596_v24 }
  0xc9   : > { %v618_v45 = vadd.f32 %v617_v50, %v2596_v24 }
  0xce   : > { %v2569_v51 = vpop.f32.mrf.mxu2 }
  0xcf   : > { %v2571_v52 = vpop.f32.mrf.mxu3  ;;  %v591_v53 = vpop.f32.mrf.mxu0 }
  0xd0   : > { %v620_v54 = vpop.f32.mrf.mxu1  ;;  %v592_v36 = vadd.f32 %v591_v53, %v2585_v10 }
  0xd1   : > { %v621_v32 = vadd.f32 %v620_v54, %v2585_v10  ;;  %v694_v54 = vmax.f32 %v2594_v23, 0.0 }
  0xd2   : > { %v701_v53 = vmax.f32 %v592_v36, 0.0 }
  0xd6   : > { %v2573_v55 = vpop.f32.mrf.mxu2 }
  0xd7   : > { %v2575_v56 = vpop.f32.mrf.mxu3  ;;  %v593_v57 = vpop.f32.mrf.mxu0 }
  0xd8   : > { %v622_v58 = vpop.f32.mrf.mxu1  ;;  %v594_v33 = vadd.f32 %v593_v57, %v482_v29 }
  0xd9   : > { %v623_v37 = vadd.f32 %v622_v58, %v482_v29 }
  0xda   : > { %v705_v58 = vmax.f32 %v594_v33, 0.0 }
  0xdc   : > { %v737_v23 = vpack.c.bf16 %v705_v58, %v701_v53 }
  0xde   : > { %v2577_v59 = vpop.f32.mrf.mxu2 }
  0xdf   : > { %v2579_v60 = vpop.f32.mrf.mxu3  ;;  %v596_v61 = vpop.f32.mrf.mxu0 }
  0xe0   : > { %v625_v62 = vpop.f32.mrf.mxu1  ;;  %v597_v19 = vadd.f32 %v596_v61, %v2581_v0  ;;  %v702_v61 = vmax.f32 %v621_v32, 0.0  ;;  %v645_v32 = vadd.f32 %v2565_v47, %v2587_v12 }
  0xe1   : > { %v626_v25 = vadd.f32 %v625_v62, %v2581_v0 }
  0xe2   : > { %v709_v38 = vmax.f32 %v597_v19, 0.0 }
  0xe3   : > { %v710_v41 = vmax.f32 %v626_v25, 0.0 }
  0xe6   : > { %v654_v1 = vpop.f32.mrf.mxu2 }
  0xe7   : > { %v2583_v2 = vpop.f32.mrf.mxu3  ;;  %v598_v3 = vpop.f32.mrf.mxu0 }
  0xe8   : > { %v627_v4 = vpop.f32.mrf.mxu1  ;;  %v599_v20 = vadd.f32 %v598_v3, %v492_v6 }
  0xe9   : > { %v628_v26 = vadd.f32 %v627_v4, %v492_v6 }
  0xea   : > { %v713_v39 = vmax.f32 %v599_v20, 0.0  ;;  %v652_v20 = vadd.f32 %v2577_v59, %v482_v29  ;;  %v679_v59 = vadd.f32 %v2575_v56, %v2585_v10 }
  0xeb   : > { %v714_v42 = vmax.f32 %v628_v26, 0.0  ;;  %v698_v26 = vmax.f32 %v618_v45, 0.0 }
  0xed   : > { %v734_v56 = vpack.c.bf16 %v698_v26, %v694_v54 }
  0xee   : > { %v656_v7 = vpop.f32.mrf.mxu2 }
  0xef   : > { %v685_v8 = vpop.f32.mrf.mxu3  ;;  %v601_v9 = vpop.f32.mrf.mxu0  ;;  %v657_v57 = vadd.f32 %v656_v7, %v492_v6  ;;  %v693_v7 = vmax.f32 %v2590_v18, 0.0 }
  0xf0   : > { %v630_v11 = vpop.f32.mrf.mxu1  ;;  %v602_v13 = vadd.f32 %v601_v9, %v497_v63  ;;  %v686_v4 = vadd.f32 %v685_v8, %v492_v6  ;;  %v697_v6 = vmax.f32 %v2600_v28, 0.0 }
  0xf1   : > { %v631_v15 = vadd.f32 %v630_v11, %v497_v63  ;;  %v741_v11 = vpack.c.bf16 %v713_v39, %v709_v38 }
  0xf2   : > { %v717_v30 = vmax.f32 %v602_v13, 0.0  ;;  %v706_v13 = vmax.f32 %v623_v37, 0.0  ;;  %v716_v8 = vmax.f32 %v686_v4, 0.0  ;;  %v695_v37 = vmax.f32 %v645_v32, 0.0 }
  0xf3   : > { %v718_v34 = vmax.f32 %v631_v15, 0.0 }
  0xf4   : > { %v738_v25 = vpack.c.bf16 %v706_v13, %v702_v61 }
  0xf6   : > { %v659_v14 = vpop.f32.mrf.mxu2 }
  0xf7   : > { %v688_v16 = vpop.f32.mrf.mxu3  ;;  %v603_v17 = vpop.f32.mrf.mxu0  ;;  %v660_v43 = vadd.f32 %v659_v14, %v497_v63  ;;  %v655_v14 = vadd.f32 %v654_v1, %v2581_v0  ;;  %v681_v1 = vadd.f32 %v2579_v60, %v482_v29  ;;  %v707_v60 = vmax.f32 %v652_v20, 0.0 }
  0xf8   : > { %v604_v21 = vadd.f32 %v603_v17, %v502_v5  ;;  %v632_v22 = vpop.f32.mrf.mxu1  ;;  %v689_v46 = vadd.f32 %v688_v16, %v497_v63  ;;  %v742_v63 = vpack.c.bf16 %v714_v42, %v710_v41  ;;  %v684_v16 = vadd.f32 %v2583_v2, %v2581_v0 }
  0xf9   : > { %v633_v27 = vadd.f32 %v632_v22, %v502_v5  ;;  %v719_v15 = vmax.f32 %v660_v43, 0.0  ;;  %v650_v0 = vadd.f32 %v2573_v55, %v2585_v10  ;;  %v711_v2 = vmax.f32 %v655_v14, 0.0  ;;  %v2056_v10 = vld [vmem:[#allocation4] sm:$0xff] }
  0xfa   : > { %v721_v31 = vmax.f32 %v604_v21, 0.0  ;;  %v720_v17 = vmax.f32 %v689_v46, 0.0  ;;  %v715_v21 = vmax.f32 %v657_v57, 0.0  ;;  %v712_v18 = vmax.f32 %v684_v16, 0.0 }
  0xfb   : > { %v722_v35 = vmax.f32 %v633_v27, 0.0  ;;  %v647_v27 = vadd.f32 %v2569_v51, %v2596_v24  ;;  %v676_v29 = vadd.f32 %v2571_v52, %v2596_v24  ;;  %v708_v55 = vmax.f32 %v681_v1, 0.0 }
  0xfc   : > { %v745_v40 = vpack.c.bf16 %v721_v31, %v717_v30  ;;  %v743_v28 = vpack.c.bf16 %v715_v21, %v711_v2  ;;  %v744_v30 = vpack.c.bf16 %v716_v8, %v712_v18  ;;  %v733_v31 = vpack.c.bf16 %v697_v6, %v693_v7 }
  0xfd   : > { %v746_v44 = vpack.c.bf16 %v722_v35, %v718_v34  ;;  %v703_v33 = vmax.f32 %v650_v0, 0.0  ;;  %v674_v34 = vadd.f32 %v2567_v48, %v2587_v12  ;;  %v704_v51 = vmax.f32 %v679_v59, 0.0  ;;  %v2057_v48 = vld [vmem:[#allocation4 + $0x8] sm:$0xff]  ;;  %v2058_v12 = vld [vmem:[#allocation4 + $0x10] sm:$0xff] }
  0xfe   : > { %v661_v49 = vpop.f32.mrf.mxu2  ;;  %786 = vmatpush.bf16.msrb.mxu0 %v745_v40  ;;  %v699_v35 = vmax.f32 %v647_v27, 0.0  ;;  %v700_v24 = vmax.f32 %v676_v29, 0.0  ;;  %v2059_v40 = vld [vmem:[#allocation4 + $0x18] sm:$0xff] }
  0xff   : > { %v662_v62 = vadd.f32 %v661_v49, %v502_v5  ;;  %v690_v3 = vpop.f32.mrf.mxu3  ;;  %815 = vmatpush.bf16.msrb.mxu1 %v746_v44  ;;  %v739_v52 = vpack.c.bf16 %v707_v60, %v703_v33  ;;  %v740_v36 = vpack.c.bf16 %v708_v55, %v704_v51  ;;  %v696_v47 = vmax.f32 %v674_v34, 0.0 }
 0x100   : > { %v691_v9 = vadd.f32 %v690_v3, %v502_v5  ;;  %v735_v38 = vpack.c.bf16 %v699_v35, %v695_v37 }
 0x101   : > { %v723_v50 = vmax.f32 %v662_v62, 0.0  ;;  %v736_v39 = vpack.c.bf16 %v700_v24, %v696_v47 }
 0x102   : > { %v724_v19 = vmax.f32 %v691_v9, 0.0  ;;  %787 = vmatpush.bf16.msrb.mxu0 %v741_v11 }
 0x103   : > { %816 = vmatpush.bf16.msrb.mxu1 %v742_v63  ;;  %v747_v5 = vpack.c.bf16 %v723_v50, %v719_v15 }
 0x104   : > { %v748_v22 = vpack.c.bf16 %v724_v19, %v720_v17 }
 0x105   : > { %844 = vmatpush.bf16.msrb.mxu2 %v747_v5 }
 0x106   : > { %873 = vmatpush.bf16.msrb.mxu3 %v748_v22  ;;  %788 = vmatpush.bf16.msrb.mxu0 %v737_v23 }
 0x107   : > { %817 = vmatpush.bf16.msrb.mxu1 %v738_v25 }
 0x109   : > { %845 = vmatpush.bf16.msrb.mxu2 %v743_v28 }
 0x10a   : > { %874 = vmatpush.bf16.msrb.mxu3 %v744_v30  ;;  %789 = vmatpush.bf16.msrb.mxu0 %v733_v31 }
 0x10b   : > { %818 = vmatpush.bf16.msrb.mxu1 %v734_v56 }
 0x10d   : > { %846 = vmatpush.bf16.msrb.mxu2 %v739_v52  ;;  %1938 = vmatmul.msk.bf16.vlgmr.msrb.gmra.mxu0 %vm769_vm1, %v2056_v10 }
 0x10e   : > { %875 = vmatpush.bf16.msrb.mxu3 %v740_v36  ;;  %1942 = vmatmul.msk.bf16.vlgmr.msrb.gmra.mxu1 %vm769_vm1, %v2056_v10 }
 0x111   : > { %847 = vmatpush.bf16.msrb.mxu2 %v735_v38 }
 0x112   : > { %876 = vmatpush.bf16.msrb.mxu3 %v736_v39 }
 0x114   : > { %1946 = vmatmul.msk.bf16.vlgmr.msrb.gmra.mxu2 %vm769_vm1, %v2056_v10 }
 0x115   : > { %1950 = vmatmul.msk.bf16.vlgmr.msrb.gmra.mxu3 %vm769_vm1, %v2056_v10 }
 0x11d   : > { %1939 = vmatmul.msk.bf16.gmra.mxu0 %vm769_vm1, %v2057_v48 }
 0x11e   : > { %1943 = vmatmul.msk.bf16.gmra.mxu1 %vm769_vm1, %v2057_v48 }
 0x124   : > { %1947 = vmatmul.msk.bf16.gmra.mxu2 %vm769_vm1, %v2057_v48 }
 0x125   : > { %1951 = vmatmul.msk.bf16.gmra.mxu3 %vm769_vm1, %v2057_v48 }
 0x12d   : > { %1940 = vmatmul.msk.bf16.gmra.mxu0 %vm769_vm1, %v2058_v12 }
 0x12e   : > { %1944 = vmatmul.msk.bf16.gmra.mxu1 %vm769_vm1, %v2058_v12 }
 0x134   : > { %1948 = vmatmul.msk.bf16.gmra.mxu2 %vm769_vm1, %v2058_v12 }
 0x135   : > { %1952 = vmatmul.msk.bf16.gmra.mxu3 %vm769_vm1, %v2058_v12  ;;  %v2060_v12 = vld [vmem:[#allocation7] sm:$0xff] }
 0x13d   : > { %1941 = vmatmul.msk.bf16.gmra.mxu0 %vm769_vm1, %v2059_v40 }
 0x13e   : > { %1945 = vmatmul.msk.bf16.gmra.mxu1 %vm769_vm1, %v2059_v40 }
 0x144   : > { %1949 = vmatmul.msk.bf16.gmra.mxu2 %vm769_vm1, %v2059_v40 }
 0x145   : > { %1953 = vmatmul.msk.bf16.gmra.mxu3 %vm769_vm1, %v2059_v40 }
 0x18a   : > { %v2641_v41 = vpop.f32.mrf.mxu0 }
 0x18b   : > { %v2643_v42 = vpop.f32.mrf.mxu1  ;;  %v898_v31 = vmax.f32 %v2641_v41, 0.0 }
 0x18c   : > { %v899_v56 = vmax.f32 %v2643_v42, 0.0 }
 0x192   : > { %v793_v43 = vpop.f32.mrf.mxu0 }
 0x193   : > { %v2645_v44 = vpop.f32.mrf.mxu1  ;;  %v902_v32 = vmax.f32 %v793_v43, 0.0 }
 0x194   : > { %v903_v10 = vmax.f32 %v2645_v44, 0.0 }
 0x195   : > { %v932_v36 = vpack.c.bf16 %v902_v32, %v898_v31 }
 0x196   : > { %v933_v38 = vpack.c.bf16 %v903_v10, %v899_v56 }
 0x197   : > { %v2647_v45 = vpop.f32.mrf.mxu2 }
 0x198   : > { %v2649_v46 = vpop.f32.mrf.mxu3 }
 0x19a   : > { %v796_v49 = vpop.f32.mrf.mxu0 }
 0x19b   : > { %v825_v61 = vpop.f32.mrf.mxu1  ;;  %v906_v28 = vmax.f32 %v796_v49, 0.0 }
 0x19c   : > { %v907_v55 = vmax.f32 %v825_v61, 0.0 }
 0x19f   : > { %v2651_v54 = vpop.f32.mrf.mxu2 }
 0x1a0   : > { %v2653_v57 = vpop.f32.mrf.mxu3 }
 0x1a2   : > { %v798_v62 = vpop.f32.mrf.mxu0 }
 0x1a3   : > { %v827_v3 = vpop.f32.mrf.mxu1  ;;  %v910_v29 = vmax.f32 %v798_v62, 0.0 }
 0x1a4   : > { %v911_v30 = vmax.f32 %v827_v3, 0.0 }
 0x1a5   : > { %v936_v33 = vpack.c.bf16 %v910_v29, %v906_v28 }
 0x1a6   : > { %v937_v34 = vpack.c.bf16 %v911_v30, %v907_v55 }
 0x1a7   : > { %v2655_v53 = vpop.f32.mrf.mxu2 }
 0x1a8   : > { %v2657_v58 = vpop.f32.mrf.mxu3  ;;  %v908_v3 = vmax.f32 %v2655_v53, 0.0 }
 0x1aa   : > { %v801_v4 = vpop.f32.mrf.mxu0 }
 0x1ab   : > { %v830_v9 = vpop.f32.mrf.mxu1  ;;  %v914_v6 = vmax.f32 %v801_v4, 0.0  ;;  %v909_v4 = vmax.f32 %v2657_v58, 0.0 }
 0x1ac   : > { %v915_v23 = vmax.f32 %v830_v9, 0.0  ;;  %v904_v9 = vmax.f32 %v2651_v54, 0.0  ;;  %v1963_v54 = vld [vmem:[%s436_s19 + $0x2] ss:$4 sm:$0xf] }
 0x1ad   : > { %v1019_v53 = vmul.f32 %v1963_v54, %v1963_v54 }
 0x1af   : > { %v2659_v11 = vpop.f32.mrf.mxu2 }
 0x1b0   : > { %v2661_v13 = vpop.f32.mrf.mxu3  ;;  %v912_v44 = vmax.f32 %v2659_v11, 0.0  ;;  %v905_v11 = vmax.f32 %v2653_v57, 0.0 }
 0x1b1   : > { %v913_v61 = vmax.f32 %v2661_v13, 0.0  ;;  %v901_v13 = vmax.f32 %v2649_v46, 0.0  ;;  %v1962_v46 = vld [vmem:[%s436_s19 + $0x1] ss:$4 sm:$0xf] }
 0x1b2   : > { %v803_v14 = vpop.f32.mrf.mxu0 }
 0x1b3   : > { %v832_v15 = vpop.f32.mrf.mxu1  ;;  %v918_v1 = vmax.f32 %v803_v14, 0.0  ;;  %v938_v14 = vpack.c.bf16 %v912_v44, %v908_v3 }
 0x1b4   : > { %v919_v0 = vmax.f32 %v832_v15, 0.0  ;;  %v939_v15 = vpack.c.bf16 %v913_v61, %v909_v4 }
 0x1b5   : > { %v940_v59 = vpack.c.bf16 %v918_v1, %v914_v6  ;;  %v1033_v6 = vmul.f32 0.5900436, %v1962_v46 }
 0x1b6   : > { %v941_v27 = vpack.c.bf16 %v919_v0, %v915_v23  ;;  %v1024_v23 = vmul.f32 0.48860252, %v1963_v54  ;;  %v1039_v0 = vmul.f32 0.4570458, %v1962_v46 }
 0x1b7   : > { %v859_v50 = vpop.f32.mrf.mxu2 }
 0x1b8   : > { %v888_v63 = vpop.f32.mrf.mxu3  ;;  %v916_v42 = vmax.f32 %v859_v50, 0.0  ;;  %v900_v50 = vmax.f32 %v2647_v45, 0.0  ;;  %v1012_v45 = vld [vmem:[%s436_s19] ss:$4 sm:$0xf] }
 0x1b9   : > { %v917_v43 = vmax.f32 %v888_v63, 0.0  ;;  %v1017_v57 = vmul.f32 %v1012_v45, %v1012_v45  ;;  %v1020_v58 = vmul.f32 %v1962_v46, %v1012_v45 }
 0x1ba   : > { %v806_v16 = vpop.f32.mrf.mxu0  ;;  %v934_v63 = vpack.c.bf16 %v904_v9, %v900_v50 }
 0x1bb   : > { %v835_v17 = vpop.f32.mrf.mxu1  ;;  %v922_v20 = vmax.f32 %v806_v16, 0.0  ;;  %v935_v16 = vpack.c.bf16 %v905_v11, %v901_v13  ;;  %v1037_v1 = vmul.f32 2.8906114, %v1020_v58  ;;  %v1051_v29 = vsub.f32 0.0, %v1017_v57 }
 0x1bc   : > { %v923_v21 = vmax.f32 %v835_v17, 0.0  ;;  %v1018_v17 = vmul.f32 %v1962_v46, %v1962_v46 }
 0x1be   : > { %v1052_v30 = vmul.f32 3.0, %v1018_v17 }
 0x1bf   : > { %v861_v19 = vpop.f32.mrf.mxu2 }
 0x1c0   : > { %v890_v7 = vpop.f32.mrf.mxu3  ;;  %v920_v39 = vmax.f32 %v861_v19, 0.0  ;;  %v1021_v19 = vmul.f32 %v1963_v54, %v1962_v46 }
 0x1c1   : > { %v921_v40 = vmax.f32 %v890_v7, 0.0  ;;  %v1028_v7 = vmul.f32 0.9461747, %v1019_v53 }
 0x1c2   : > { %v808_v5 = vpop.f32.mrf.mxu0  ;;  %v942_v49 = vpack.c.bf16 %v920_v39, %v916_v42 }
 0x1c3   : > { %v926_v8 = vmax.f32 %v808_v5, 0.0  ;;  %v837_v22 = vpop.f32.mrf.mxu1  ;;  %v943_v62 = vpack.c.bf16 %v921_v40, %v917_v43  ;;  %v1023_v5 = vmul.f32 -0.48860252, %v1962_v46 }
 0x1c4   : > { %v927_v2 = vmax.f32 %v837_v22, 0.0  ;;  %v1022_v22 = vmul.f32 %v1963_v54, %v1012_v45 }
 0x1c5   : > { %v944_v25 = vpack.c.bf16 %v926_v8, %v922_v20  ;;  %v1034_v20 = vmul.f32 -3.0, %v1017_v57  ;;  %v1055_v8 = vlaneseq }
 0x1c6   : > { %v945_v26 = vpack.c.bf16 %v927_v2, %v923_v21  ;;  %v1040_v21 = vmul.f32 5.0, %v1019_v53  ;;  %v1025_v2 = vmul.f32 -0.48860252, %v1012_v45  ;;  %v1030_v55 = vmul.f32 -1.0925485, %v1022_v22 }
 0x1c7   : > { %v864_v18 = vpop.f32.mrf.mxu2  ;;  %960 = vmatpush.bf16.msra.mxu0 %v944_v25  ;;  %v1026_v25 = vmul.f32 1.0925485, %v1020_v58  ;;  %vm2682_vm2 = vcmp.lt.s32.totalorder %v1055_v8, 512  ;;  %v1035_v28 = vadd.f32 %v1034_v20, %v1018_v17 }
 0x1c8   : > { %v893_v60 = vpop.f32.mrf.mxu3  ;;  %974 = vmatpush.bf16.msra.mxu1 %v945_v26  ;;  %v924_v35 = vmax.f32 %v864_v18, 0.0  ;;  %v1031_v26 = vsub.f32 %v1017_v57, %v1018_v17  ;;  %v1027_v18 = vmul.f32 -1.0925485, %v1021_v19  ;;  %1062 = vst.msk [vmem:[#allocation2 + $0x1] ss:$8 sm:$0xf] %vm2682_vm2, %v1023_v5 }
 0x1c9   : > { %v925_v37 = vmax.f32 %v893_v60, 0.0  ;;  %v1964_v60 = vadd.f32 -0.31539157, %v1028_v7  ;;  %1065 = vst.msk [vmem:[#allocation2 + $0x2] ss:$8 sm:$0xf] %vm2682_vm2, %v1024_v23  ;;  %v1036_v10 = vmul.f32 %v1035_v28, %v1033_v6 }
 0x1ca   : > { %v1032_v31 = vmul.f32 0.54627424, %v1031_v26  ;;  %v1041_v32 = vsub.f32 1.0, %v1040_v21  ;;  %1068 = vst.msk [vmem:[#allocation2 + $0x3] ss:$8 sm:$0xf] %vm2682_vm2, %v1025_v2 }
 0x1cb   : > { %961 = vmatpush.bf16.msra.mxu0 %v940_v59  ;;  %v1965_v56 = vadd.f32 -3.0, %v1040_v21  ;;  %1071 = vst.msk [vmem:[#allocation2 + $0x4] ss:$8 sm:$0xf] %vm2682_vm2, %v1026_v25  ;;  %v2062_v23 = vld [vmem:[%s2867_s6 + $0x8] sm:$0xff]  ;;  %v2064_v59 = vld [vmem:[%s2867_s6 + $0x18] sm:$0xff] }
 0x1cc   : > { %975 = vmatpush.bf16.msra.mxu1 %v941_v27  ;;  %v2339_v27 = vmov 0.2820948   ;;  %1074 = vst.msk [vmem:[#allocation2 + $0x5] ss:$8 sm:$0xf] %vm2682_vm2, %v1027_v18 }
 0x1cd   : > { %1059 = vst.msk [vmem:[#allocation2] ss:$8 sm:$0xf] %vm2682_vm2, %v2339_v27 }
 0x1ce   : > { %1077 = vst.msk [vmem:[#allocation2 + $0x6] ss:$8 sm:$0xf] %vm2682_vm2, %v1964_v60 }
 0x1cf   : > { %v866_v51 = vpop.f32.mrf.mxu2  ;;  %962 = vmatpush.bf16.msra.mxu0 %v936_v33  ;;  %v1043_v33 = vmul.f32 0.37317634, %v1963_v54  ;;  %1080 = vst.msk [vmem:[#allocation2 + $0x7] ss:$8 sm:$0xf] %vm2682_vm2, %v1030_v55 }
 0x1d0   : > { %v928_v52 = vmax.f32 %v866_v51, 0.0  ;;  %v895_v24 = vpop.f32.mrf.mxu3  ;;  %976 = vmatpush.bf16.msra.mxu1 %v937_v34  ;;  %v1046_v34 = vmul.f32 0.4570458, %v1012_v45  ;;  %v1038_v51 = vmul.f32 %v1963_v54, %v1037_v1  ;;  %1083 = vst.msk [vmem:[#allocation2 + $0x20] ss:$8 sm:$0xf] %vm2682_vm2, %v1032_v31 }
 0x1d1   : > { %v929_v47 = vmax.f32 %v895_v24, 0.0  ;;  %v1050_v24 = vmul.f32 0.5900436, %v1012_v45  ;;  %1086 = vst.msk [vmem:[#allocation2 + $0x21] ss:$8 sm:$0xf] %vm2682_vm2, %v1036_v10 }
 0x1d2   : > { %v946_v48 = vpack.c.bf16 %v928_v52, %v924_v35  ;;  %v1048_v35 = vmul.f32 1.4453057, %v1963_v54  ;;  %v1042_v52 = vmul.f32 %v1041_v32, %v1039_v0  ;;  %1089 = vst.msk [vmem:[#allocation2 + $0x22] ss:$8 sm:$0xf] %vm2682_vm2, %v1038_v51 }
 0x1d3   : > { %v947_v41 = vpack.c.bf16 %v929_v47, %v925_v37  ;;  %963 = vmatpush.bf16.msra.mxu0 %v932_v36  ;;  %v1053_v36 = vadd.f32 %v1052_v30, %v1051_v29  ;;  %v1045_v37 = vmul.f32 %v1965_v56, %v1043_v33  ;;  %v1047_v47 = vmul.f32 %v1046_v34, %v1041_v32 }
 0x1d4   : > { %977 = vmatpush.bf16.msra.mxu1 %v933_v38  ;;  %988 = vmatpush.bf16.msra.mxu2 %v946_v48  ;;  %v1049_v38 = vmul.f32 %v1048_v35, %v1031_v26  ;;  %1092 = vst.msk [vmem:[#allocation2 + $0x23] ss:$8 sm:$0xf] %vm2682_vm2, %v1042_v52  ;;  %v2063_v26 = vld [vmem:[%s2867_s6 + $0x10] sm:$0xff] }
 0x1d5   : > { %1002 = vmatpush.bf16.msra.mxu3 %v947_v41  ;;  %v1054_v39 = vmul.f32 %v1053_v36, %v1050_v24  ;;  %1095 = vst.msk [vmem:[#allocation2 + $0x24] ss:$8 sm:$0xf] %vm2682_vm2, %v1045_v37 }
 0x1d6   : > { %1958 = vmatmul.msk.bf16.vlgmr.msra.gmra.mxu0 %vm769_vm1, %v2060_v12  ;;  %1098 = vst.msk [vmem:[#allocation2 + $0x25] ss:$8 sm:$0xf] %vm2682_vm2, %v1047_v47  ;;  %v1114_v41 = vld [vmem:[#allocation2] sm:$0xff]  ;;  %v1116_v57 = vld [vmem:[#allocation2 + $0x10] sm:$0xff]  ;;  %v1117_v7 = vld [vmem:[#allocation2 + $0x18] sm:$0xff] }
 0x1d7   : > { %1959 = vmatmul.msk.bf16.vlgmr.msra.gmra.mxu1 %vm769_vm1, %v2060_v12  ;;  %1101 = vst.msk [vmem:[#allocation2 + $0x26] ss:$8 sm:$0xf] %vm2682_vm2, %v1049_v38 }
 0x1d8   : > { %989 = vmatpush.bf16.msra.mxu2 %v942_v49  ;;  %1104 = vst.msk [vmem:[#allocation2 + $0x27] ss:$8 sm:$0xf] %vm2682_vm2, %v1054_v39  ;;  %v1115_v49 = vld [vmem:[#allocation2 + $0x8] sm:$0xff] }
 0x1d9   : > { %1003 = vmatpush.bf16.msra.mxu3 %v943_v62 }
 0x1dc   : > { %990 = vmatpush.bf16.msra.mxu2 %v938_v14  ;;  %v2061_v14 = vld [vmem:[%s2867_s6] sm:$0xff] }
 0x1dd   : > { %1004 = vmatpush.bf16.msra.mxu3 %v939_v15 }
 0x1df   : > { %v1118_v42 = vld [vmem:[#allocation2 + $0x20] sm:$0xff]  ;;  %v1119_v61 = vld [vmem:[#allocation2 + $0x28] sm:$0xff]  ;;  %v1120_v53 = vld [vmem:[#allocation2 + $0x30] sm:$0xff] }
 0x1e0   : > { %991 = vmatpush.bf16.msra.mxu2 %v934_v63  ;;  %v1130_v3 = vpack.c.bf16 %v1118_v42, %v1114_v41  ;;  %v1131_v4 = vpack.c.bf16 %v1119_v61, %v1115_v49  ;;  %v1121_v20 = vld [vmem:[#allocation2 + $0x38] sm:$0xff]  ;;  %v1132_v22 = vpack.c.bf16 %v1120_v53, %v1116_v57 }
 0x1e1   : > { %1005 = vmatpush.bf16.msra.mxu3 %v935_v16  ;;  %v1133_v0 = vpack.c.bf16 %v1121_v20, %v1117_v7 }
 0x1e3   : > { %1960 = vmatmul.msk.bf16.vlgmr.msra.gmra.mxu2 %vm769_vm1, %v2060_v12 }
 0x1e4   : > { %1961 = vmatmul.msk.bf16.vlgmr.msra.gmra.mxu3 %vm769_vm1, %v2060_v12 }
 0x253   : > { %v965_v48 = vpop.f32.mrf.mxu0 }
 0x254   : > { %v979_v12 = vpop.f32.mrf.mxu1  ;;  %v1602_v11 = vmul.f32 1.442695, %v965_v48 }
 0x255   : > { %v1604_v9 = vmul.f32 1.442695, %v979_v12 }
 0x257   : > { %2147 = vpow2.f32 %v1604_v9 }
 0x258   : > { %2149 = vpow2.f32 %v1602_v11 }
 0x25b   : > { %v967_v40 = vpop.f32.mrf.mxu0 }
 0x25c   : > { %v981_v43 = vpop.f32.mrf.mxu1  ;;  %v1134_v44 = vpack.c.bf16 %v967_v40, %v965_v48 }
 0x25d   : > { %v1135_v62 = vpack.c.bf16 %v981_v43, %v979_v12  ;;  %v2148_v16 = vpop.eup %2147 }
 0x25e   : > { %1184 = vmatpush.bf16.msrb.mxu0 %v1134_v44  ;;  %v1614_v45 = vrot.slane %v2148_v16, 7  ;;  %v2150_v54 = vpop.eup %2149 }
 0x25f   : > { %1213 = vmatpush.bf16.msrb.mxu1 %v1135_v62 }
 0x260   : > { %v1618_v1 = vsel %vm1617_vm3, %v2150_v54, %v1614_v45 }
 0x262   : > { %1185 = vmatpush.bf16.msrb.mxu0 %v1130_v3 }
 0x263   : > { %1214 = vmatpush.bf16.msrb.mxu1 %v1131_v4 }
 0x265   : > { %1982 = vmatmul.msk.bf16.vlgmr.msrb.gmra.mxu0 %vm564_vm0, %v2061_v14 }
 0x266   : > { %v993_v15 = vpop.f32.mrf.mxu2  ;;  %1986 = vmatmul.msk.bf16.vlgmr.msrb.gmra.mxu1 %vm564_vm0, %v2061_v14 }
 0x267   : > { %v1606_v50 = vmul.f32 1.442695, %v993_v15  ;;  %v1007_v13 = vpop.f32.mrf.mxu3 }
 0x268   : > { %v1608_v63 = vmul.f32 1.442695, %v1007_v13 }
 0x269   : > { %2151 = vpow2.f32 %v1606_v50 }
 0x26a   : > { %2153 = vpow2.f32 %v1608_v63 }
 0x26e   : > { %v995_v46 = vpop.f32.mrf.mxu2 }
 0x26f   : > { %v2152_v58 = vpop.eup %2151  ;;  %v1009_v17 = vpop.f32.mrf.mxu3  ;;  %v1136_v19 = vpack.c.bf16 %v995_v46, %v993_v15 }
 0x270   : > { %v2154_v21 = vpop.eup %2153  ;;  %v1615_v5 = vrot.slane %v2152_v58, 6  ;;  %v1137_v6 = vpack.c.bf16 %v1009_v17, %v1007_v13 }
 0x271   : > { %v1616_v8 = vrot.slane %v2154_v21, 5  ;;  %1242 = vmatpush.bf16.msrb.mxu2 %v1136_v19  ;;  %v2065_v21 = vld [vmem:[#allocation9] sm:$0xff] }
 0x272   : > { %1271 = vmatpush.bf16.msrb.mxu3 %v1137_v6 }
 0x273   : > { %v1620_v2 = vsel %vm1619_vm4, %v1615_v5, %v1616_v8 }
 0x274   : > { %v1622_v25 = vsel %vm1621_vm5, %v1618_v1, %v1620_v2 }
 0x275   : > { %1243 = vmatpush.bf16.msrb.mxu2 %v1132_v22  ;;  %1983 = vmatmul.msk.bf16.gmra.mxu0 %vm564_vm0, %v2062_v23  ;;  %1624 = vst.msk [vmem:[%s2728_s26] ss:$4 sm:$0xf] %vm2682_vm2, %v1622_v25 }
 0x276   : > { %1272 = vmatpush.bf16.msrb.mxu3 %v1133_v0  ;;  %1987 = vmatmul.msk.bf16.gmra.mxu1 %vm564_vm0, %v2062_v23 }
 0x278   : > { %1990 = vmatmul.msk.bf16.vlgmr.msrb.gmra.mxu2 %vm564_vm0, %v2061_v14 }
 0x279   : > { %1994 = vmatmul.msk.bf16.vlgmr.msrb.gmra.mxu3 %vm564_vm0, %v2061_v14 }
 0x285   : > { %1984 = vmatmul.msk.bf16.gmra.mxu0 %vm564_vm0, %v2063_v26 }
 0x286   : > { %1988 = vmatmul.msk.bf16.gmra.mxu1 %vm564_vm0, %v2063_v26 }
 0x288   : > { %1991 = vmatmul.msk.bf16.gmra.mxu2 %vm564_vm0, %v2062_v23 }
 0x289   : > { %1995 = vmatmul.msk.bf16.gmra.mxu3 %vm564_vm0, %v2062_v23 }
 0x295   : > { %1985 = vmatmul.msk.bf16.gmra.mxu0 %vm564_vm0, %v2064_v59 }
 0x296   : > { %1989 = vmatmul.msk.bf16.gmra.mxu1 %vm564_vm0, %v2064_v59 }
 0x298   : > { %1992 = vmatmul.msk.bf16.gmra.mxu2 %vm564_vm0, %v2063_v26 }
 0x299   : > { %1996 = vmatmul.msk.bf16.gmra.mxu3 %vm564_vm0, %v2063_v26 }
 0x2a8   : > { %1993 = vmatmul.msk.bf16.gmra.mxu2 %vm564_vm0, %v2064_v59 }
 0x2a9   : > { %1997 = vmatmul.msk.bf16.gmra.mxu3 %vm564_vm0, %v2064_v59 }
 0x2e2   : > { %v1187_v18 = vpop.f32.mrf.mxu0 }
 0x2e3   : > { %v1216_v27 = vpop.f32.mrf.mxu1  ;;  %v1294_v46 = vmax.f32 %v1187_v18, 0.0 }
 0x2e4   : > { %v1295_v58 = vmax.f32 %v1216_v27, 0.0 }
 0x2ea   : > { %v1189_v60 = vpop.f32.mrf.mxu0 }
 0x2eb   : > { %v1218_v28 = vpop.f32.mrf.mxu1  ;;  %v1298_v57 = vmax.f32 %v1189_v60, 0.0 }
 0x2ec   : > { %v1299_v17 = vmax.f32 %v1218_v28, 0.0 }
 0x2ed   : > { %v1334_v7 = vpack.c.bf16 %v1298_v57, %v1294_v46 }
 0x2ee   : > { %v1335_v20 = vpack.c.bf16 %v1299_v17, %v1295_v58 }
 0x2f2   : > { %v1192_v29 = vpop.f32.mrf.mxu0 }
 0x2f3   : > { %v1221_v55 = vpop.f32.mrf.mxu1  ;;  %v1302_v50 = vmax.f32 %v1192_v29, 0.0 }
 0x2f4   : > { %v1303_v63 = vmax.f32 %v1221_v55, 0.0  ;;  %v2066_v55 = vld [vmem:[#allocation9 + $0x8] sm:$0xff] }
 0x2fa   : > { %v1194_v30 = vpop.f32.mrf.mxu0 }
 0x2fb   : > { %v1223_v31 = vpop.f32.mrf.mxu1  ;;  %v2752_v32 = vpop.f32.mrf.mxu2  ;;  %v1306_v13 = vmax.f32 %v1194_v30, 0.0 }
 0x2fc   : > { %v2754_v33 = vpop.f32.mrf.mxu3  ;;  %v1307_v16 = vmax.f32 %v1223_v31, 0.0 }
 0x2fd   : > { %v1338_v53 = vpack.c.bf16 %v1306_v13, %v1302_v50 }
 0x2fe   : > { %v1339_v19 = vpack.c.bf16 %v1307_v16, %v1303_v63 }
 0x302   : > { %v1197_v56 = vpop.f32.mrf.mxu0 }
 0x303   : > { %v1226_v10 = vpop.f32.mrf.mxu1  ;;  %v2756_v34 = vpop.f32.mrf.mxu2  ;;  %v1310_v41 = vmax.f32 %v1197_v56, 0.0 }
 0x304   : > { %v2758_v51 = vpop.f32.mrf.mxu3  ;;  %v1311_v61 = vmax.f32 %v1226_v10, 0.0 }
 0x30a   : > { %v1199_v35 = vpop.f32.mrf.mxu0 }
 0x30b   : > { %v1228_v52 = vpop.f32.mrf.mxu1  ;;  %v2760_v24 = vpop.f32.mrf.mxu2  ;;  %v1314_v42 = vmax.f32 %v1199_v35, 0.0  ;;  %v1300_v35 = vmax.f32 %v2756_v34, 0.0  ;;  %v2067_v34 = vld [vmem:[#allocation9 + $0x10] sm:$0xff] }
 0x30c   : > { %v2762_v36 = vpop.f32.mrf.mxu3  ;;  %v1315_v62 = vmax.f32 %v1228_v52, 0.0  ;;  %v1304_v56 = vmax.f32 %v2760_v24, 0.0 }
 0x30d   : > { %v1342_v11 = vpack.c.bf16 %v1314_v42, %v1310_v41  ;;  %v1305_v10 = vmax.f32 %v2762_v36, 0.0 }
 0x30e   : > { %v1343_v15 = vpack.c.bf16 %v1315_v62, %v1311_v61 }
 0x312   : > { %v1202_v37 = vpop.f32.mrf.mxu0 }
 0x313   : > { %v1231_v47 = vpop.f32.mrf.mxu1  ;;  %v2764_v38 = vpop.f32.mrf.mxu2  ;;  %v1318_v48 = vmax.f32 %v1202_v37, 0.0  ;;  %v1301_v37 = vmax.f32 %v2758_v51, 0.0 }
 0x314   : > { %v2766_v39 = vpop.f32.mrf.mxu3  ;;  %v1319_v12 = vmax.f32 %v1231_v47, 0.0  ;;  %v1308_v28 = vmax.f32 %v2764_v38, 0.0  ;;  %v1296_v38 = vmax.f32 %v2752_v32, 0.0  ;;  %v2068_v32 = vld [vmem:[#allocation9 + $0x18] sm:$0xff] }
 0x315   : > { %v1309_v30 = vmax.f32 %v2766_v39, 0.0  ;;  %v1297_v39 = vmax.f32 %v2754_v33, 0.0 }
 0x316   : > { %v1340_v52 = vpack.c.bf16 %v1308_v28, %v1304_v56  ;;  %v1336_v24 = vpack.c.bf16 %v1300_v35, %v1296_v38  ;;  %v1530_v56 = vld [vmem:[%s2869_s8] sm:$0x3] }
 0x317   : > { %v1341_v47 = vpack.c.bf16 %v1309_v30, %v1305_v10 }
 0x31a   : > { %v1204_v40 = vpop.f32.mrf.mxu0 }
 0x31b   : > { %v1322_v43 = vmax.f32 %v1204_v40, 0.0  ;;  %v1233_v44 = vpop.f32.mrf.mxu1  ;;  %v1255_v49 = vpop.f32.mrf.mxu2 }
 0x31c   : > { %v1323_v3 = vmax.f32 %v1233_v44, 0.0  ;;  %v1284_v4 = vpop.f32.mrf.mxu3  ;;  %v1312_v27 = vmax.f32 %v1255_v49, 0.0 }
 0x31d   : > { %v1346_v9 = vpack.c.bf16 %v1322_v43, %v1318_v48  ;;  %v1313_v60 = vmax.f32 %v1284_v4, 0.0  ;;  %v1337_v48 = vpack.c.bf16 %v1301_v37, %v1297_v39 }
 0x31e   : > { %v1347_v14 = vpack.c.bf16 %v1323_v3, %v1319_v12 }
 0x31f   : > { %1386 = vmatpush.bf16.msra.mxu0 %v1346_v9 }
 0x320   : > { %1415 = vmatpush.bf16.msra.mxu1 %v1347_v14 }
 0x323   : > { %v1257_v45 = vpop.f32.mrf.mxu2  ;;  %1387 = vmatpush.bf16.msra.mxu0 %v1342_v11 }
 0x324   : > { %v1286_v54 = vpop.f32.mrf.mxu3  ;;  %1416 = vmatpush.bf16.msra.mxu1 %v1343_v15  ;;  %v1316_v25 = vmax.f32 %v1257_v45, 0.0 }
 0x325   : > { %v1317_v59 = vmax.f32 %v1286_v54, 0.0 }
 0x326   : > { %v1344_v29 = vpack.c.bf16 %v1316_v25, %v1312_v27 }
 0x327   : > { %1388 = vmatpush.bf16.msra.mxu0 %v1338_v53  ;;  %v1345_v31 = vpack.c.bf16 %v1317_v59, %v1313_v60 }
 0x328   : > { %1417 = vmatpush.bf16.msra.mxu1 %v1339_v19 }
 0x32b   : > { %v1260_v5 = vpop.f32.mrf.mxu2  ;;  %1389 = vmatpush.bf16.msra.mxu0 %v1334_v7 }
 0x32c   : > { %v1289_v6 = vpop.f32.mrf.mxu3  ;;  %1418 = vmatpush.bf16.msra.mxu1 %v1335_v20  ;;  %v1320_v8 = vmax.f32 %v1260_v5, 0.0 }
 0x32d   : > { %v1321_v0 = vmax.f32 %v1289_v6, 0.0 }
 0x32e   : > { %2014 = vmatmul.msk.bf16.vlgmr.msra.gmra.mxu0 %vm769_vm1, %v2065_v21 }
 0x32f   : > { %2018 = vmatmul.msk.bf16.vlgmr.msra.gmra.mxu1 %vm769_vm1, %v2065_v21 }
 0x333   : > { %v1262_v1 = vpop.f32.mrf.mxu2 }
 0x334   : > { %v1324_v22 = vmax.f32 %v1262_v1, 0.0  ;;  %v1291_v23 = vpop.f32.mrf.mxu3 }
 0x335   : > { %v1325_v2 = vmax.f32 %v1291_v23, 0.0 }
 0x336   : > { %v1348_v26 = vpack.c.bf16 %v1324_v22, %v1320_v8 }
 0x337   : > { %v1349_v18 = vpack.c.bf16 %v1325_v2, %v1321_v0 }
 0x338   : > { %1444 = vmatpush.bf16.msra.mxu2 %v1348_v26 }
 0x339   : > { %1473 = vmatpush.bf16.msra.mxu3 %v1349_v18 }
 0x33c   : > { %1445 = vmatpush.bf16.msra.mxu2 %v1344_v29 }
 0x33d   : > { %1474 = vmatpush.bf16.msra.mxu3 %v1345_v31 }
 0x33e   : > { %2015 = vmatmul.msk.bf16.gmra.mxu0 %vm769_vm1, %v2066_v55 }
 0x33f   : > { %2019 = vmatmul.msk.bf16.gmra.mxu1 %vm769_vm1, %v2066_v55 }
 0x340   : > { %1446 = vmatpush.bf16.msra.mxu2 %v1340_v52 }
 0x341   : > { %1475 = vmatpush.bf16.msra.mxu3 %v1341_v47 }
 0x344   : > { %1447 = vmatpush.bf16.msra.mxu2 %v1336_v24 }
 0x345   : > { %1476 = vmatpush.bf16.msra.mxu3 %v1337_v48 }
 0x347   : > { %2022 = vmatmul.msk.bf16.vlgmr.msra.gmra.mxu2 %vm769_vm1, %v2065_v21 }
 0x348   : > { %2026 = vmatmul.msk.bf16.vlgmr.msra.gmra.mxu3 %vm769_vm1, %v2065_v21 }
 0x34e   : > { %2016 = vmatmul.msk.bf16.gmra.mxu0 %vm769_vm1, %v2067_v34 }
 0x34f   : > { %2020 = vmatmul.msk.bf16.gmra.mxu1 %vm769_vm1, %v2067_v34 }
 0x357   : > { %2023 = vmatmul.msk.bf16.gmra.mxu2 %vm769_vm1, %v2066_v55 }
 0x358   : > { %2027 = vmatmul.msk.bf16.gmra.mxu3 %vm769_vm1, %v2066_v55 }
 0x35e   : > { %2017 = vmatmul.msk.bf16.gmra.mxu0 %vm769_vm1, %v2068_v32 }
 0x35f   : > { %2021 = vmatmul.msk.bf16.gmra.mxu1 %vm769_vm1, %v2068_v32 }
 0x367   : > { %2024 = vmatmul.msk.bf16.gmra.mxu2 %vm769_vm1, %v2067_v34 }
 0x368   : > { %2028 = vmatmul.msk.bf16.gmra.mxu3 %vm769_vm1, %v2067_v34 }
 0x377   : > { %2025 = vmatmul.msk.bf16.gmra.mxu2 %vm769_vm1, %v2068_v32 }
 0x378   : > { %2029 = vmatmul.msk.bf16.gmra.mxu3 %vm769_vm1, %v2068_v32 }
 0x3ab   : > { %v1391_v33 = vpop.f32.mrf.mxu0 }
 0x3ac   : > { %v1420_v51 = vpop.f32.mrf.mxu1  ;;  %v1498_v26 = vmax.f32 %v1391_v33, 0.0 }
 0x3ad   : > { %v1499_v27 = vmax.f32 %v1420_v51, 0.0 }
 0x3b3   : > { %v1393_v36 = vpop.f32.mrf.mxu0 }
 0x3b4   : > { %v1422_v12 = vpop.f32.mrf.mxu1  ;;  %v1502_v59 = vmax.f32 %v1393_v36, 0.0 }
 0x3b5   : > { %v1503_v60 = vmax.f32 %v1422_v12, 0.0 }
 0x3b6   : > { %v1531_v29 = vpack.c.bf16 %v1502_v59, %v1498_v26 }
 0x3b7   : > { %v1532_v30 = vpack.c.bf16 %v1503_v60, %v1499_v27 }
 0x3bb   : > { %v1396_v40 = vpop.f32.mrf.mxu0 }
 0x3bc   : > { %v1425_v41 = vpop.f32.mrf.mxu1  ;;  %v1506_v8 = vmax.f32 %v1396_v40, 0.0 }
 0x3bd   : > { %v1507_v0 = vmax.f32 %v1425_v41, 0.0 }
 0x3c3   : > { %v1398_v42 = vpop.f32.mrf.mxu0 }
 0x3c4   : > { %v1427_v43 = vpop.f32.mrf.mxu1  ;;  %v1510_v22 = vmax.f32 %v1398_v42, 0.0 }
 0x3c5   : > { %v1511_v2 = vmax.f32 %v1427_v43, 0.0 }
 0x3c6   : > { %v1535_v18 = vpack.c.bf16 %v1510_v22, %v1506_v8 }
 0x3c7   : > { %v1536_v28 = vpack.c.bf16 %v1511_v2, %v1507_v0 }
 0x3ca   : > { %v2792_v44 = vpop.f32.mrf.mxu2 }
 0x3cb   : > { %v2794_v49 = vpop.f32.mrf.mxu3  ;;  %v1401_v61 = vpop.f32.mrf.mxu0 }
 0x3cc   : > { %v1430_v62 = vpop.f32.mrf.mxu1  ;;  %v1514_v57 = vmax.f32 %v1401_v61, 0.0 }
 0x3cd   : > { %v1515_v19 = vmax.f32 %v1430_v62, 0.0 }
 0x3d2   : > { %v2796_v3 = vpop.f32.mrf.mxu2 }
 0x3d3   : > { %v2798_v4 = vpop.f32.mrf.mxu3  ;;  %v1403_v9 = vpop.f32.mrf.mxu0  ;;  %v1504_v62 = vmax.f32 %v2796_v3, 0.0 }
 0x3d4   : > { %v1432_v14 = vpop.f32.mrf.mxu1  ;;  %v1518_v53 = vmax.f32 %v1403_v9, 0.0 }
 0x3d5   : > { %v1519_v7 = vmax.f32 %v1432_v14, 0.0  ;;  %v1505_v14 = vmax.f32 %v2798_v4, 0.0 }
 0x3d6   : > { %v1539_v6 = vpack.c.bf16 %v1518_v53, %v1514_v57 }
 0x3d7   : > { %v1540_v1 = vpack.c.bf16 %v1519_v7, %v1515_v19 }
 0x3da   : > { %v2800_v11 = vpop.f32.mrf.mxu2 }
 0x3db   : > { %v2802_v15 = vpop.f32.mrf.mxu3  ;;  %v1406_v50 = vpop.f32.mrf.mxu0  ;;  %v1508_v43 = vmax.f32 %v2800_v11, 0.0 }
 0x3dc   : > { %v1435_v13 = vpop.f32.mrf.mxu1  ;;  %v1522_v63 = vmax.f32 %v1406_v50, 0.0  ;;  %v1509_v61 = vmax.f32 %v2802_v15, 0.0 }
 0x3dd   : > { %v1523_v45 = vmax.f32 %v1435_v13, 0.0  ;;  %v1500_v13 = vmax.f32 %v2792_v44, 0.0 }
 0x3e2   : > { %v2804_v16 = vpop.f32.mrf.mxu2 }
 0x3e3   : > { %v2806_v54 = vpop.f32.mrf.mxu3  ;;  %v1408_v46 = vpop.f32.mrf.mxu0  ;;  %v1512_v12 = vmax.f32 %v2804_v16, 0.0  ;;  %v1533_v16 = vpack.c.bf16 %v1504_v62, %v1500_v13 }
 0x3e4   : > { %v1526_v58 = vmax.f32 %v1408_v46, 0.0  ;;  %v1437_v17 = vpop.f32.mrf.mxu1  ;;  %v1513_v41 = vmax.f32 %v2806_v54, 0.0 }
 0x3e5   : > { %v1527_v20 = vmax.f32 %v1437_v17, 0.0  ;;  %v1537_v9 = vpack.c.bf16 %v1512_v12, %v1508_v43 }
 0x3e6   : > { %v1543_v21 = vpack.c.bf16 %v1526_v58, %v1522_v63  ;;  %v1538_v50 = vpack.c.bf16 %v1513_v41, %v1509_v61  ;;  %v1501_v63 = vmax.f32 %v2794_v49, 0.0 }
 0x3e7   : > { %v1544_v5 = vpack.c.bf16 %v1527_v20, %v1523_v45 }
 0x3e8   : > { %1554 = vmatpush.bf16.msrb.mxu0 %v1543_v21  ;;  %v1534_v45 = vpack.c.bf16 %v1505_v14, %v1501_v63 }
 0x3e9   : > { %1567 = vmatpush.bf16.msrb.mxu1 %v1544_v5 }
 0x3ea   : > { %v1459_v23 = vpop.f32.mrf.mxu2 }
 0x3eb   : > { %v1488_v25 = vpop.f32.mrf.mxu3  ;;  %v1516_v51 = vmax.f32 %v1459_v23, 0.0 }
 0x3ec   : > { %1555 = vmatpush.bf16.msrb.mxu0 %v1539_v6  ;;  %v1517_v36 = vmax.f32 %v1488_v25, 0.0 }
 0x3ed   : > { %1568 = vmatpush.bf16.msrb.mxu1 %v1540_v1 }
 0x3f0   : > { %1556 = vmatpush.bf16.msrb.mxu0 %v1535_v18 }
 0x3f1   : > { %1569 = vmatpush.bf16.msrb.mxu1 %v1536_v28 }
 0x3f2   : > { %v1461_v55 = vpop.f32.mrf.mxu2 }
 0x3f3   : > { %v1490_v31 = vpop.f32.mrf.mxu3  ;;  %v1520_v48 = vmax.f32 %v1461_v55, 0.0 }
 0x3f4   : > { %1557 = vmatpush.bf16.msrb.mxu0 %v1531_v29  ;;  %v1521_v32 = vmax.f32 %v1490_v31, 0.0 }
 0x3f5   : > { %1570 = vmatpush.bf16.msrb.mxu1 %v1532_v30  ;;  %v1541_v40 = vpack.c.bf16 %v1520_v48, %v1516_v51 }
 0x3f6   : > { %v1542_v42 = vpack.c.bf16 %v1521_v32, %v1517_v36 }
 0x3f7   : > { %2030 = vmatmul.msk.bf16.vlgmr.msrb.gmra.mxu0 %vm769_vm1, %v1530_v56 }
 0x3f8   : > { %2031 = vmatmul.msk.bf16.vlgmr.msrb.gmra.mxu1 %vm769_vm1, %v1530_v56 }
 0x3fa   : > { %v1464_v10 = vpop.f32.mrf.mxu2 }
 0x3fb   : > { %v1493_v35 = vpop.f32.mrf.mxu3  ;;  %v1524_v37 = vmax.f32 %v1464_v10, 0.0 }
 0x3fc   : > { %v1525_v39 = vmax.f32 %v1493_v35, 0.0 }
 0x402   : > { %v1466_v52 = vpop.f32.mrf.mxu2 }
 0x403   : > { %v1528_v47 = vmax.f32 %v1466_v52, 0.0  ;;  %v1495_v38 = vpop.f32.mrf.mxu3 }
 0x404   : > { %v1529_v24 = vmax.f32 %v1495_v38, 0.0 }
 0x405   : > { %v1545_v34 = vpack.c.bf16 %v1528_v47, %v1524_v37 }
 0x406   : > { %v1546_v33 = vpack.c.bf16 %v1529_v24, %v1525_v39 }
 0x407   : > { %1580 = vmatpush.bf16.msrb.mxu2 %v1545_v34 }
 0x408   : > { %1593 = vmatpush.bf16.msrb.mxu3 %v1546_v33 }
 0x40b   : > { %1581 = vmatpush.bf16.msrb.mxu2 %v1541_v40 }
 0x40c   : > { %1594 = vmatpush.bf16.msrb.mxu3 %v1542_v42 }
 0x40f   : > { %1582 = vmatpush.bf16.msrb.mxu2 %v1537_v9 }
 0x410   : > { %1595 = vmatpush.bf16.msrb.mxu3 %v1538_v50 }
 0x413   : > { %1583 = vmatpush.bf16.msrb.mxu2 %v1533_v16 }
 0x414   : > { %1596 = vmatpush.bf16.msrb.mxu3 %v1534_v45 }
 0x416   : > { %2032 = vmatmul.msk.bf16.vlgmr.msrb.gmra.mxu2 %vm769_vm1, %v1530_v56 }
 0x417   : > { %2033 = vmatmul.msk.bf16.vlgmr.msrb.gmra.mxu3 %vm769_vm1, %v1530_v56 }
 0x474   : > { %v1559_v11 = vpop.f32.mrf.mxu0 }
 0x475   : > { %v1572_v3 = vpop.f32.mrf.mxu1  ;;  %v2034_v15 = vmul.f32 -1.442695, %v1559_v11 }
 0x476   : > { %v2035_v54 = vmul.f32 -1.442695, %v1572_v3 }
 0x477   : > { %2155 = vpow2.f32 %v2034_v15 }
 0x478   : > { %2157 = vpow2.f32 %v2035_v54 }
 0x47c   : > { %v1561_v4 = vpop.f32.mrf.mxu0 }
 0x47d   : > { %v2156_v44 = vpop.eup %2155  ;;  %v1574_v46 = vpop.f32.mrf.mxu1 }
 0x47e   : > { %v2158_v57 = vpop.eup %2157  ;;  %v1637_v49 = vadd.f32 1.0, %v2156_v44 }
 0x47f   : > { %v1638_v53 = vadd.f32 1.0, %v2158_v57 }
 0x480   : > { %2159 = vrcp.f32 %v1637_v49  ;;  %vm1646_vm7 = vweird.f32 %v1637_v49  ;;  %v1652_v5 = vand.u32 2147483648, %v1637_v49  ;;  %v1650_v8 = vand.u32 2147483647, %v1637_v49 }
 0x481   : > { %2161 = vrcp.f32 %v1638_v53  ;;  %vm1661_vm6 = vweird.f32 %v1638_v53  ;;  %v1667_v20 = vand.u32 2147483648, %v1638_v53  ;;  %v1665_v1 = vand.u32 2147483647, %v1638_v53 }
 0x482   : > { %v1653_v25 = vor.u32 1.1754944e-38, %v1652_v5  ;;  %vm1651_vm13 = vcmp.eq.f32.partialorder %v1650_v8, 8.507059e+37 }
 0x483   : > { %v1668_v0 = vor.u32 1.1754944e-38, %v1667_v20  ;;  %vm1666_vm12 = vcmp.eq.f32.partialorder %v1665_v1, 8.507059e+37 }
 0x486   : > { %v2160_v58 = vpop.eup %2159 }
 0x487   : > { %v2162_v17 = vpop.eup %2161  ;;  %v1642_v19 = vmul.f32 %v2160_v58, %v1637_v49  ;;  %vm1647_vm8 = vweird.f32 %v2160_v58 }
 0x488   : > { %v1657_v7 = vmul.f32 %v2162_v17, %v1638_v53  ;;  %vm1662_vm9 = vweird.f32 %v2162_v17  ;;  %vm1648_vm10 = vmor %vm1646_vm7, %vm1647_vm8 }
 0x489   : > { %v1643_v21 = vsub.f32 1.0, %v1642_v19  ;;  %vm1663_vm11 = vmor %vm1661_vm6, %vm1662_vm9 }
 0x48a   : > { %v1658_v6 = vsub.f32 1.0, %v1657_v7 }
 0x48b   : > { %v1644_v22 = vmul.f32 %v2160_v58, %v1643_v21 }
 0x48c   : > { %v1659_v23 = vmul.f32 %v2162_v17, %v1658_v6 }
 0x48d   : > { %v1645_v2 = vadd.f32 %v2160_v58, %v1644_v22 }
 0x48e   : > { %v1660_v26 = vadd.f32 %v2162_v17, %v1659_v23 }
 0x48f   : > { %v1649_v59 = vsel %vm1648_vm10, %v2160_v58, %v1645_v2 }
 0x490   : > { %v1664_v18 = vsel %vm1663_vm11, %v2162_v17, %v1660_v26  ;;  %v1654_v60 = vsel %vm1651_vm13, %v1653_v25, %v1649_v59 }
 0x491   : > { %v1669_v27 = vsel %vm1666_vm12, %v1668_v0, %v1664_v18 }
 0x492   : > { %v1705_v28 = vrot.slane %v1669_v27, 4 }
 0x494   : > { %v1708_v29 = vsel %vm1707_vm14, %v1654_v60, %v1705_v28 }
 0x495   : > { %v1710_v55 = vrot.slane %v1708_v29, 7 }
 0x497   : > { %1714 = vst [vmem:[%s2728_s26] sm:$0xee] %v1710_v55 }
 0x499   : > { %v1585_v30 = vpop.f32.mrf.mxu2 }
 0x49a   : > { %v1598_v31 = vpop.f32.mrf.mxu3  ;;  %v2036_v56 = vmul.f32 -1.442695, %v1585_v30 }
 0x49b   : > { %v2037_v10 = vmul.f32 -1.442695, %v1598_v31 }
 0x49c   : > { %2163 = vpow2.f32 %v2036_v56 }
 0x49d   : > { %2165 = vpow2.f32 %v2037_v10 }
 0x4a1   : > { %v1587_v35 = vpop.f32.mrf.mxu2 }
 0x4a2   : > { %v2164_v52 = vpop.eup %2163  ;;  %v1600_v37 = vpop.f32.mrf.mxu3 }
 0x4a3   : > { %v2166_v47 = vpop.eup %2165  ;;  %v1639_v38 = vadd.f32 1.0, %v2164_v52 }
 0x4a4   : > { %v1640_v39 = vadd.f32 1.0, %v2166_v47 }
 0x4a5   : > { %2167 = vrcp.f32 %v1639_v38  ;;  %vm1676_vm1 = vweird.f32 %v1639_v38  ;;  %v1682_v43 = vand.u32 2147483648, %v1639_v38  ;;  %v1680_v62 = vand.u32 2147483647, %v1639_v38 }
 0x4a6   : > { %2169 = vrcp.f32 %v1640_v39  ;;  %v1697_v36 = vand.u32 2147483648, %v1640_v39  ;;  %v1695_v41 = vand.u32 2147483647, %v1640_v39  ;;  %vm1691_vm2 = vweird.f32 %v1640_v39 }
 0x4a7   : > { %v1683_v63 = vor.u32 1.1754944e-38, %v1682_v43  ;;  %vm1681_vm6 = vcmp.eq.f32.partialorder %v1680_v62, 8.507059e+37 }
 0x4a8   : > { %v1698_v9 = vor.u32 1.1754944e-38, %v1697_v36  ;;  %vm1696_vm5 = vcmp.eq.f32.partialorder %v1695_v41, 8.507059e+37 }
 0x4ab   : > { %v2168_v24 = vpop.eup %2167 }
 0x4ac   : > { %v2170_v48 = vpop.eup %2169  ;;  %v1672_v34 = vmul.f32 %v2168_v24, %v1639_v38  ;;  %vm1677_vm15 = vweird.f32 %v2168_v24 }
 0x4ad   : > { %v1687_v32 = vmul.f32 %v2170_v48, %v1640_v39  ;;  %vm1692_vm0 = vweird.f32 %v2170_v48  ;;  %vm1678_vm3 = vmor %vm1676_vm1, %vm1677_vm15 }
 0x4ae   : > { %v1673_v33 = vsub.f32 1.0, %v1672_v34  ;;  %vm1693_vm4 = vmor %vm1691_vm2, %vm1692_vm0 }
 0x4af   : > { %v1688_v51 = vsub.f32 1.0, %v1687_v32 }
 0x4b0   : > { %v1674_v12 = vmul.f32 %v2168_v24, %v1673_v33 }
 0x4b1   : > { %v1689_v40 = vmul.f32 %v2170_v48, %v1688_v51 }
 0x4b2   : > { %v1675_v42 = vadd.f32 %v2168_v24, %v1674_v12 }
 0x4b3   : > { %v1690_v61 = vadd.f32 %v2170_v48, %v1689_v40 }
 0x4b4   : > { %v1679_v50 = vsel %vm1678_vm3, %v2168_v24, %v1675_v42 }
 0x4b5   : > { %v1694_v14 = vsel %vm1693_vm4, %v2170_v48, %v1690_v61  ;;  %v1684_v45 = vsel %vm1681_vm6, %v1683_v63, %v1679_v50 }
 0x4b6   : > { %v1699_v13 = vsel %vm1696_vm5, %v1698_v9, %v1694_v14 }
 0x4b7   : > { %v1706_v16 = vrot.slane %v1699_v13, 4 }
 0x4b9   : > { %v1709_v11 = vsel %vm1707_vm14, %v1684_v45, %v1706_v16 }
 0x4ba   : > { %v1711_v3 = vrot.slane %v1709_v11, 7 }
 0x4bc   : > { %1715 = vst [vmem:[%s2728_s26 + $0x8] sm:$0xee] %v1711_v3 }
 0x4bd   : > { %2288 = shalt.err (!%p2285_p11)
}
 0x4be   : > { %2082 = dma.vmem_to_hbm [thread:$0]  (%p2433_p6), %s1731_s13, 256, %s1733_s22, %s1717_s17  }
 0x4bf PF: > { %s1744_s15 = sand.u32 1, %s2319_s30   ;;  %p2095_p12 = pnand %p1846_p1, %p2439_p10 }
 0x4c0   : > { %s1745_s26 = scalar_lea.sflag [#allocation6], %s1744_s15 }
 0x4c1   : > { %p2096_p13 = pneg %p2095_p12 }
 0x4c3   : > { %2314 = dma.done.wait (%p2096_p13), %s1745_s26, 256  }
 0x4c4   : > { %2316 = vsyncadd (%p2096_p13), %s1745_s26, 4294967040  ;;  %s2886_s12 = sld [smem:[#allocation14_spill]]  ;;  %s2888_s30 = smov %s2323_s10 }
 0x4c5   : > { %s2887_s28 = sld [smem:[#allocation15_spill]]  ;;  %s2889_s10 = smov %s2327_s11 }
 0x4ca   : > { %p21_p0 = scmp.ge.s32.totalorder %s2886_s12, 4  }
 0x4cb   : > { %s2890_s11 = smov %s2887_s28 }
 0x4cc   :  { %23 = sbr.rel (!%p21_p0) target bundleno = 8 (0x8), region = 152 }
 0x4d1   :  { %1751 = vsyncpa [#allocation5], 1 }
 0x4d2   :  { %1753 = vsyncpa [#allocation5 + $0x1], 1 }
 0x4d3   :  { %1754 = vsyncpa [#allocation8], 1 }
 0x4d4   :  { %1755 = vsyncpa [#allocation6], 1 }
 0x4d5   :  { %1757 = vsyncpa [#allocation6 + $0x1], 1 }

</bundles_post_ra>
